<compile_context>
chip_gen: v7x
topology: tpu7x:2x2x1
jax: 0.10.0
libtpu: 0.0.40
codegen_flags: <defaults>
</compile_context>

<pallas_src>
import functools
import math

import jax
import jax.numpy as jnp
from jax.experimental import pallas as pl
from jax.experimental.pallas import tpu as pltpu

HI = jax.lax.Precision.HIGHEST


def _decoder_r_kernel(L, x_ref,
                      w1_ref, b1_ref,
                      w2k0_ref, w2k1_ref, w2k2_ref, b2_ref,
                      w30_ref, w31_ref, w32_ref, b3_ref,
                      wf1_ref, bf1_ref, wf2_ref, bf2_ref, wf3_ref, bf3_ref,
                      o_ref):
    f32 = jnp.float32
    bf16 = jnp.bfloat16
    N = x_ref.shape[0]                     # block_b * L rows in this grid step
    cat = jnp.concatenate

    def mm(a, w_ref):
        # bf16 operands, f32 accumulation on the MXU.
        return jnp.dot(a, w_ref[...], preferred_element_type=f32)

    def relu(v):
        return jnp.maximum(v, 0.0)

    # Per-row sequence index s = row % L; used only to zero invalid shifted rows.
    s_idx = jax.lax.broadcasted_iota(jnp.int32, (N, 1), 0) % L
    first_row = s_idx == 0
    last_row = s_idx == (L - 1)

    # ---- deconv1: ConvTranspose1d(64->128, k=3, s=2, pad=1, out_pad=1) ----
    # Input lanes: [x[s] | x[s+1] | x[s-1] | 0]  (256, wrapper-packed, bf16)
    # One matmul; output lanes: [e1 | o1 | e1[s+1] | o1[s-1]]  (block weight built
    # in the wrapper), where e1[s] = y1[2s], o1[s] = y1[2s+1].
    V = relu(mm(x_ref[...], w1_ref) + b1_ref[...])                    # (N,512) f32
    e1 = V[:, 0:128].astype(bf16)
    o1 = V[:, 128:256].astype(bf16)
    e1n = jnp.where(last_row, 0.0, V[:, 256:384]).astype(bf16)        # e1[s+1]; 0 at s=L-1
    o1p = V[:, 384:512].astype(bf16)                                  # o1[s-1] (s=0 masked later)

    # ---- deconv2: ConvTranspose1d(128->128, k=3, s=2, pad=1, out_pad=1) ----
    #   sa = e1@W2[1]            sb  = e1@W2[2]  + o1@W2[0]
    #   sc = o1@W2[1]            sd  = o1@W2[2]  + e1n@W2[0]
    #   sa_n = e1n@W2[1] (s+1)   sd_p = o1p@W2[2] + e1@W2[0] (s-1)
    # All operands are contiguous row windows of one flat bf16 stack S2.
    S2 = cat([o1p, e1, o1, e1n], axis=0)                              # (4N,128) bf16
    EV = relu(mm(S2[N:4 * N], w2k1_ref) + b2_ref[...])                # rows [sa; sc; sa_n]
    OD = relu(mm(S2[0:3 * N], w2k2_ref) + mm(S2[N:4 * N], w2k0_ref)
              + b2_ref[...])                                          # rows [sd_p; sb; sd]
    sa = EV[0:N]
    sc = EV[N:2 * N]
    sa_n = jnp.where(last_row, 0.0, EV[2 * N:3 * N])                  # sa[s+1]; 0 at s=L-1
    sd_p = jnp.where(first_row, 0.0, OD[0:N])                         # sd[s-1]; 0 at s=0
    sb = OD[N:2 * N]
    sd = OD[2 * N:3 * N]

    # ---- deconv3: ConvTranspose1d(128->256, k=3, s=1, pad=1) fused with fc head ----
    # y3[4s+p] = Q[p+2]@W3[0] + Q[p+1]@W3[1] + Q[p]@W3[2] + b3 with
    # Q = [sd_p, sa, sb, sc, sd, sa_n]; each tap is a contiguous row window of Q,
    # and the result H is phase-major (4N rows), so the fc head runs once.
    Q = cat([sd_p.astype(bf16), sa.astype(bf16), sb.astype(bf16),
             sc.astype(bf16), sd.astype(bf16), sa_n.astype(bf16)], axis=0)   # (6N,128)
    H = relu(mm(Q[2 * N:6 * N], w30_ref) + mm(Q[N:5 * N], w31_ref)
             + mm(Q[0:4 * N], w32_ref) + b3_ref[...])                 # (4N,256) f32
    H = relu(mm(H.astype(bf16), wf1_ref) + bf1_ref[...])              # (4N,128)
    H = relu(mm(H.astype(bf16), wf2_ref) + bf2_ref[...])              # (4N,64)
    Y = mm(H.astype(bf16), wf3_ref) + bf3_ref[...]                    # (4N,128), cols >=14 are 0

    # Single lane-dense store: phase-major (4, N, 128) block.
    o_ref[...] = Y.reshape(4, N, 128).astype(o_ref.dtype)


def _pick_block_b(B, L, target_rows=256):
    """Batch tile so N = block_b*L is a multiple of 16 (bf16 sublane tile),
    ~target_rows rows per grid step (fits default scoped VMEM on v5e/v6e/v7x),
    and >= 2 grid steps when the batch allows it (v7x megacore).  The batch is
    zero-padded up to a block multiple by the wrapper."""
    unit = 16 // math.gcd(L, 16)                 # smallest block_b keeping N % 16 == 0
    rows_per_unit = unit * L
    total_units = -(-B // unit)                  # ceil
    block_units = max(1, min(total_units, max(1, target_rows // rows_per_unit)))
    if block_units >= total_units and total_units >= 2:
        block_units = (total_units + 1) // 2     # guarantee G >= 2
    return unit * block_units


def decoder_r_forward(x, params, block_b=None):
    """x: (B, L, 64) float32  ->  (B, 4L, 14) float32."""
    (w1, b1, w2, b2, w3, b3, wf1, bf1, wf2, bf2, wf3, bf3) = params
    B, L, Cin = x.shape
    assert Cin == 64, Cin
    bf16 = jnp.bfloat16
    f32 = jnp.float32

    if block_b is None:
        block_b = _pick_block_b(B, L)
    G = pl.cdiv(B, block_b)
    B_pad = G * block_b
    if B_pad != B:
        x = jnp.pad(x, ((0, B_pad - B), (0, 0), (0, 0)))
    N = block_b * L
    R = B_pad * L

    # Wrapper-side +-1 sequence shifts (zero padded, per batch element) packed into
    # one lane-dense bf16 input: [x[s] | x[s+1] | x[s-1] | 0]  -> (R, 256).
    zrow = jnp.zeros((B_pad, 1, Cin), x.dtype)
    x_next = jnp.concatenate([x[:, 1:, :], zrow], axis=1)
    x_prev = jnp.concatenate([zrow, x[:, :-1, :]], axis=1)
    zpad = jnp.zeros((B_pad, L, Cin), x.dtype)
    x256 = jnp.concatenate([x, x_next, x_prev, zpad], axis=-1).astype(bf16).reshape(R, 256)

    # deconv1 block weight (256, 512): rows = [h | hn | hp | pad], cols = [e1 | o1 | e1n | o1p]
    #   e1 = h@W1[1];  o1 = h@W1[2] + hn@W1[0];  e1n = hn@W1[1];  o1p = h@W1[0] + hp@W1[2]
    z64 = jnp.zeros((64, 128), f32)
    w1_h = jnp.concatenate([w1[1], w1[2], z64, w1[0]], axis=1)
    w1_hn = jnp.concatenate([z64, w1[0], w1[1], z64], axis=1)
    w1_hp = jnp.concatenate([z64, z64, z64, w1[2]], axis=1)
    w1_big = jnp.concatenate([w1_h, w1_hn, w1_hp, jnp.zeros((64, 512), f32)],
                             axis=0).astype(bf16)                     # (256, 512)
    b1_4 = jnp.tile(b1, 4).reshape(1, 512)                            # f32

    w2k0 = w2[0].astype(bf16)
    w2k1 = w2[1].astype(bf16)
    w2k2 = w2[2].astype(bf16)
    b2_2 = b2.reshape(1, -1)
    w3_0 = w3[0].astype(bf16)
    w3_1 = w3[1].astype(bf16)
    w3_2 = w3[2].astype(bf16)
    b3_2 = b3.reshape(1, -1)
    wf1_b = wf1.astype(bf16)
    bf1_2 = bf1.reshape(1, -1)
    wf2_b = wf2.astype(bf16)
    bf2_2 = bf2.reshape(1, -1)
    # Lane-dense final layer: pad fc3 to 128 output lanes (zeros), slice after the call.
    wf3_p = jnp.zeros((64, 128), f32).at[:, :14].set(wf3).astype(bf16)
    bf3_p = jnp.zeros((1, 128), f32).at[0, :14].set(bf3)

    def full(a):
        return pl.BlockSpec(a.shape, lambda g: (0,) * a.ndim)

    kernel = functools.partial(_decoder_r_kernel, L)

    out = pl.pallas_call(
        kernel,
        out_shape=jax.ShapeDtypeStruct((4, R, 128), jnp.float32),
        grid=(G,),
        in_specs=[
            pl.BlockSpec((N, 256), lambda g: (g, 0)),
            full(w1_big), full(b1_4),
            full(w2k0), full(w2k1), full(w2k2), full(b2_2),
            full(w3_0), full(w3_1), full(w3_2), full(b3_2),
            full(wf1_b), full(bf1_2), full(wf2_b), full(bf2_2),
            full(wf3_p), full(bf3_p),
        ],
        out_specs=pl.BlockSpec((4, N, 128), lambda g: (0, g, 0)),
        compiler_params=pltpu.CompilerParams(
            dimension_semantics=("parallel",),
            vmem_limit_bytes=32 * 1024 * 1024),
    )(x256, w1_big, b1_4, w2k0, w2k1, w2k2, b2_2,
      w3_0, w3_1, w3_2, b3_2, wf1_b, bf1_2, wf2_b, bf2_2, wf3_p, bf3_p)

    # out[r, b*L + s, :14] == y[b, 4*s + r, :]  ->  (B, 4L, 14)   (glue only)
    out = out.reshape(4, B_pad, L, 128)[:, :B, :, :14]
    return jnp.transpose(out, (1, 2, 0, 3)).reshape(B, 4 * L, 14)


# ---------------------------------------------------------------------------
# Deterministic parameter init (shapes from Decoder_r.__init__).
# Conv-transpose weights are stored as (K, Cin, Cout); linear weights as (in, out).
# ---------------------------------------------------------------------------
def init_params(key):
    ks = jax.random.split(key, 12)

    def u(k, shape, fan):
        bound = 1.0 / math.sqrt(fan)
        return jax.random.uniform(k, shape, jnp.float32, -bound, bound)

    w1 = u(ks[0], (3, 64, 128), 64 * 3);   b1 = u(ks[1], (128,), 64 * 3)
    w2 = u(ks[2], (3, 128, 128), 128 * 3); b2 = u(ks[3], (128,), 128 * 3)
    w3 = u(ks[4], (3, 128, 256), 128 * 3); b3 = u(ks[5], (256,), 128 * 3)
    wf1 = u(ks[6], (256, 128), 256);       bf1 = u(ks[7], (128,), 256)
    wf2 = u(ks[8], (128, 64), 128);        bf2 = u(ks[9], (64,), 128)
    wf3 = u(ks[10], (64, 14), 64);         bf3 = u(ks[11], (14,), 64)
    return (w1, b1, w2, b2, w3, b3, wf1, bf1, wf2, bf2, wf3, bf3)


# ---------------------------------------------------------------------------
# Pure-JAX/XLA reference (PyTorch semantics) for the correctness check.
# ---------------------------------------------------------------------------
def ref_forward(x, params):
    (w1, b1, w2, b2, w3, b3, wf1, bf1, wf2, bf2, wf3, bf3) = params

    def conv_transpose1d(h, w_kio, bias, stride, pad, out_pad):
        # h: (N, Cin, L); w_kio: (K, Cin, Cout)
        K = w_kio.shape[0]
        w_oik = jnp.transpose(jnp.flip(w_kio, axis=0), (2, 1, 0))  # (Cout, Cin, K)
        y = jax.lax.conv_general_dilated(
            h, w_oik,
            window_strides=(1,),
            padding=[(K - 1 - pad, K - 1 - pad + out_pad)],
            lhs_dilation=(stride,),
            rhs_dilation=(1,),
            dimension_numbers=("NCH", "OIH", "NCH"),
            precision=HI)
        return y + bias[None, :, None]

    h = jnp.transpose(x, (0, 2, 1))                 # (B, 64, L)
    h = jax.nn.relu(conv_transpose1d(h, w1, b1, 2, 1, 1))
    h = jax.nn.relu(conv_transpose1d(h, w2, b2, 2, 1, 1))
    h = jax.nn.relu(conv_transpose1d(h, w3, b3, 1, 1, 0))
    h = jnp.transpose(h, (0, 2, 1))                 # (B, 4L, 256)
    h = jax.nn.relu(jnp.dot(h, wf1, precision=HI) + bf1)
    h = jax.nn.relu(jnp.dot(h, wf2, precision=HI) + bf2)
    return jnp.dot(h, wf3, precision=HI) + bf3


if __name__ == "__main__":
    key = jax.random.PRNGKey(0)
    kx, kp = jax.random.split(key)

    B, L = 2, 8                                     # input seq len 8 -> output seq len 32
    x = jax.random.normal(kx, (B, L, 64), jnp.float32)
    params = init_params(kp)

    out = decoder_r_forward(x, params)
    out = jax.block_until_ready(out)

    ref = jax.block_until_ready(ref_forward(x, params))

    assert out.shape == (B, 4 * L, 14), out.shape
    max_err = float(jnp.max(jnp.abs(out - ref)))
    # bf16 matmul operands with f32 accumulation.
    assert max_err < 2e-2, f"kernel/reference mismatch, max abs err = {max_err}"

    print("KERNEL_OK")
</pallas_src>

<mosaic_0001>
module attributes {stable_mosaic.version = 11 : i64} {
  func.func @_decoder_r_kernel(%arg0: i32, %arg1: memref<16x256xbf16, #tpu.memory_space<vmem>>, %arg2: memref<256x512xbf16, #tpu.memory_space<vmem>>, %arg3: memref<1x512xf32, #tpu.memory_space<vmem>>, %arg4: memref<128x128xbf16, #tpu.memory_space<vmem>>, %arg5: memref<128x128xbf16, #tpu.memory_space<vmem>>, %arg6: memref<128x128xbf16, #tpu.memory_space<vmem>>, %arg7: memref<1x128xf32, #tpu.memory_space<vmem>>, %arg8: memref<128x256xbf16, #tpu.memory_space<vmem>>, %arg9: memref<128x256xbf16, #tpu.memory_space<vmem>>, %arg10: memref<128x256xbf16, #tpu.memory_space<vmem>>, %arg11: memref<1x256xf32, #tpu.memory_space<vmem>>, %arg12: memref<256x128xbf16, #tpu.memory_space<vmem>>, %arg13: memref<1x128xf32, #tpu.memory_space<vmem>>, %arg14: memref<128x64xbf16, #tpu.memory_space<vmem>>, %arg15: memref<1x64xf32, #tpu.memory_space<vmem>>, %arg16: memref<64x128xbf16, #tpu.memory_space<vmem>>, %arg17: memref<1x128xf32, #tpu.memory_space<vmem>>, %arg18: memref<4x16x128xf32, #tpu.memory_space<vmem>>) attributes {dimension_semantics = [#tpu.dimension_semantics<parallel>], iteration_bounds = array<i64: 1>, scalar_prefetch = 0 : i64, scratch_operands = 0 : i64, tpu.core_type = #tpu.core_type<tc>, window_params = [{transform_indices = @transform_0, window_bounds = array<i64: 16, 256>}, {pipeline_mode = #tpu.pipeline_mode<synchronous>, transform_indices = @transform_1, window_bounds = array<i64: 256, 512>}, {pipeline_mode = #tpu.pipeline_mode<synchronous>, transform_indices = @transform_2, window_bounds = array<i64: 1, 512>}, {pipeline_mode = #tpu.pipeline_mode<synchronous>, transform_indices = @transform_3, window_bounds = array<i64: 128, 128>}, {pipeline_mode = #tpu.pipeline_mode<synchronous>, transform_indices = @transform_4, window_bounds = array<i64: 128, 128>}, {pipeline_mode = #tpu.pipeline_mode<synchronous>, transform_indices = @transform_5, window_bounds = array<i64: 128, 128>}, {pipeline_mode = #tpu.pipeline_mode<synchronous>, transform_indices = @transform_6, window_bounds = array<i64: 1, 128>}, {pipeline_mode = #tpu.pipeline_mode<synchronous>, transform_indices = @transform_7, window_bounds = array<i64: 128, 256>}, {pipeline_mode = #tpu.pipeline_mode<synchronous>, transform_indices = @transform_8, window_bounds = array<i64: 128, 256>}, {pipeline_mode = #tpu.pipeline_mode<synchronous>, transform_indices = @transform_9, window_bounds = array<i64: 128, 256>}, {pipeline_mode = #tpu.pipeline_mode<synchronous>, transform_indices = @transform_10, window_bounds = array<i64: 1, 256>}, {pipeline_mode = #tpu.pipeline_mode<synchronous>, transform_indices = @transform_11, window_bounds = array<i64: 256, 128>}, {pipeline_mode = #tpu.pipeline_mode<synchronous>, transform_indices = @transform_12, window_bounds = array<i64: 1, 128>}, {pipeline_mode = #tpu.pipeline_mode<synchronous>, transform_indices = @transform_13, window_bounds = array<i64: 128, 64>}, {pipeline_mode = #tpu.pipeline_mode<synchronous>, transform_indices = @transform_14, window_bounds = array<i64: 1, 64>}, {pipeline_mode = #tpu.pipeline_mode<synchronous>, transform_indices = @transform_15, window_bounds = array<i64: 64, 128>}, {pipeline_mode = #tpu.pipeline_mode<synchronous>, transform_indices = @transform_16, window_bounds = array<i64: 1, 128>}, {transform_indices = @transform_17, window_bounds = array<i64: 4, 16, 128>}]} {
    %0 = tpu.iota {dimensions = array<i32: 0>} : vector<16x1xi32>
    %c8_i32 = arith.constant 8 : i32
    %c0_i32 = arith.constant 0 : i32
    %1 = arith.cmpi eq, %c8_i32, %c0_i32 : i32
    %c1_i32 = arith.constant 1 : i32
    %2 = arith.select %1, %c1_i32, %c8_i32 : i32
    %3 = vector.broadcast %2 : i32 to vector<16x1xi32>
    %4 = arith.remsi %0, %3 : vector<16x1xi32>
    %c0_i32_0 = arith.constant 0 : i32
    %5 = vector.broadcast %c0_i32_0 : i32 to vector<16x1xi32>
    %6 = arith.cmpi ne, %4, %5 : vector<16x1xi32>
    %c0_i32_1 = arith.constant 0 : i32
    %7 = vector.broadcast %c0_i32_1 : i32 to vector<16x1xi32>
    %8 = arith.cmpi slt, %4, %7 : vector<16x1xi32>
    %c0_i32_2 = arith.constant 0 : i32
    %9 = arith.cmpi slt, %2, %c0_i32_2 : i32
    %10 = vector.broadcast %9 : i1 to vector<16x1xi1>
    %11 = vector.broadcast %10 : vector<16x1xi1> to vector<16x1xi1>
    %12 = arith.xori %8, %11 : vector<16x1xi1>
    %13 = arith.andi %12, %6 : vector<16x1xi1>
    %14 = vector.broadcast %2 : i32 to vector<16x1xi32>
    %15 = arith.addi %4, %14 : vector<16x1xi32>
    %16 = arith.select %13, %15, %4 : vector<16x1xi1>, vector<16x1xi32>
    %c0_i32_3 = arith.constant 0 : i32
    %17 = vector.broadcast %c0_i32_3 : i32 to vector<16x1xi32>
    %18 = arith.cmpi eq, %16, %17 : vector<16x1xi32>
    %c7_i32 = arith.constant 7 : i32
    %19 = vector.broadcast %c7_i32 : i32 to vector<16x1xi32>
    %20 = arith.cmpi eq, %16, %19 : vector<16x1xi32>
    %c0 = arith.constant 0 : index
    %c0_4 = arith.constant 0 : index
    %21 = vector.load %arg1[%c0, %c0_4] : memref<16x256xbf16, #tpu.memory_space<vmem>>, vector<16x256xbf16>
    %c0_5 = arith.constant 0 : index
    %c0_6 = arith.constant 0 : index
    %22 = vector.load %arg2[%c0_5, %c0_6] : memref<256x512xbf16, #tpu.memory_space<vmem>>, vector<256x512xbf16>
    %cst = arith.constant dense<0.000000e+00> : vector<16x512xf32>
    %23 = tpu.matmul %21, %22, %cst {dimension_numbers = #tpu.dot_dimension_numbers<[1], [0], [0], [1], [0, 0, 1, 1], [], []>} : vector<16x256xbf16>, vector<256x512xbf16>, vector<16x512xf32> -> vector<16x512xf32>
    %c0_7 = arith.constant 0 : index
    %c0_8 = arith.constant 0 : index
    %24 = vector.load %arg3[%c0_7, %c0_8] : memref<1x512xf32, #tpu.memory_space<vmem>>, vector<1x512xf32>
    %25 = vector.broadcast %24 : vector<1x512xf32> to vector<16x512xf32>
    %26 = arith.addf %23, %25 : vector<16x512xf32>
    %cst_9 = arith.constant 0.000000e+00 : f32
    %27 = vector.broadcast %cst_9 : f32 to vector<16x512xf32>
    %28 = arith.maximumf %26, %27 : vector<16x512xf32>
    %29 = vector.extract_strided_slice %28 {offsets = [0, 0], sizes = [16, 128], strides = [1, 1]} : vector<16x512xf32> to vector<16x128xf32>
    %30 = arith.truncf %29 : vector<16x128xf32> to vector<16x128xbf16>
    %31 = vector.extract_strided_slice %28 {offsets = [0, 128], sizes = [16, 128], strides = [1, 1]} : vector<16x512xf32> to vector<16x128xf32>
    %32 = arith.truncf %31 : vector<16x128xf32> to vector<16x128xbf16>
    %33 = vector.extract_strided_slice %28 {offsets = [0, 256], sizes = [16, 128], strides = [1, 1]} : vector<16x512xf32> to vector<16x128xf32>
    %cst_10 = arith.constant 0.000000e+00 : f32
    %34 = vector.shape_cast %20 : vector<16x1xi1> to vector<16x1xi1>
    %35 = vector.broadcast %34 : vector<16x1xi1> to vector<16x128xi1>
    %36 = vector.broadcast %cst_10 : f32 to vector<16x128xf32>
    %37 = arith.select %35, %36, %33 : vector<16x128xi1>, vector<16x128xf32>
    %38 = arith.truncf %37 : vector<16x128xf32> to vector<16x128xbf16>
    %39 = vector.extract_strided_slice %28 {offsets = [0, 384], sizes = [16, 128], strides = [1, 1]} : vector<16x512xf32> to vector<16x128xf32>
    %40 = arith.truncf %39 : vector<16x128xf32> to vector<16x128xbf16>
    %41 = tpu.concatenate %40, %30, %32, %38 in 0 : vector<16x128xbf16>, vector<16x128xbf16>, vector<16x128xbf16>, vector<16x128xbf16> -> vector<64x128xbf16>
    %42 = vector.extract_strided_slice %41 {offsets = [16, 0], sizes = [48, 128], strides = [1, 1]} : vector<64x128xbf16> to vector<48x128xbf16>
    %c0_11 = arith.constant 0 : index
    %c0_12 = arith.constant 0 : index
    %43 = vector.load %arg5[%c0_11, %c0_12] : memref<128x128xbf16, #tpu.memory_space<vmem>>, vector<128x128xbf16>
    %cst_13 = arith.constant dense<0.000000e+00> : vector<48x128xf32>
    %44 = tpu.matmul %42, %43, %cst_13 {dimension_numbers = #tpu.dot_dimension_numbers<[1], [0], [0], [1], [0, 0, 1, 1], [], []>} : vector<48x128xbf16>, vector<128x128xbf16>, vector<48x128xf32> -> vector<48x128xf32>
    %c0_14 = arith.constant 0 : index
    %c0_15 = arith.constant 0 : index
    %45 = vector.load %arg7[%c0_14, %c0_15] : memref<1x128xf32, #tpu.memory_space<vmem>>, vector<1x128xf32>
    %46 = vector.broadcast %45 : vector<1x128xf32> to vector<48x128xf32>
    %47 = arith.addf %44, %46 : vector<48x128xf32>
    %cst_16 = arith.constant 0.000000e+00 : f32
    %48 = vector.broadcast %cst_16 : f32 to vector<48x128xf32>
    %49 = arith.maximumf %47, %48 : vector<48x128xf32>
    %50 = vector.extract_strided_slice %41 {offsets = [0, 0], sizes = [48, 128], strides = [1, 1]} : vector<64x128xbf16> to vector<48x128xbf16>
    %c0_17 = arith.constant 0 : index
    %c0_18 = arith.constant 0 : index
    %51 = vector.load %arg6[%c0_17, %c0_18] : memref<128x128xbf16, #tpu.memory_space<vmem>>, vector<128x128xbf16>
    %cst_19 = arith.constant dense<0.000000e+00> : vector<48x128xf32>
    %52 = tpu.matmul %50, %51, %cst_19 {dimension_numbers = #tpu.dot_dimension_numbers<[1], [0], [0], [1], [0, 0, 1, 1], [], []>} : vector<48x128xbf16>, vector<128x128xbf16>, vector<48x128xf32> -> vector<48x128xf32>
    %53 = vector.extract_strided_slice %41 {offsets = [16, 0], sizes = [48, 128], strides = [1, 1]} : vector<64x128xbf16> to vector<48x128xbf16>
    %c0_20 = arith.constant 0 : index
    %c0_21 = arith.constant 0 : index
    %54 = vector.load %arg4[%c0_20, %c0_21] : memref<128x128xbf16, #tpu.memory_space<vmem>>, vector<128x128xbf16>
    %cst_22 = arith.constant dense<0.000000e+00> : vector<48x128xf32>
    %55 = tpu.matmul %53, %54, %cst_22 {dimension_numbers = #tpu.dot_dimension_numbers<[1], [0], [0], [1], [0, 0, 1, 1], [], []>} : vector<48x128xbf16>, vector<128x128xbf16>, vector<48x128xf32> -> vector<48x128xf32>
    %56 = arith.addf %52, %55 : vector<48x128xf32>
    %c0_23 = arith.constant 0 : index
    %c0_24 = arith.constant 0 : index
    %57 = vector.load %arg7[%c0_23, %c0_24] : memref<1x128xf32, #tpu.memory_space<vmem>>, vector<1x128xf32>
    %58 = vector.broadcast %57 : vector<1x128xf32> to vector<48x128xf32>
    %59 = arith.addf %56, %58 : vector<48x128xf32>
    %cst_25 = arith.constant 0.000000e+00 : f32
    %60 = vector.broadcast %cst_25 : f32 to vector<48x128xf32>
    %61 = arith.maximumf %59, %60 : vector<48x128xf32>
    %62 = vector.extract_strided_slice %49 {offsets = [0, 0], sizes = [16, 128], strides = [1, 1]} : vector<48x128xf32> to vector<16x128xf32>
    %63 = vector.extract_strided_slice %49 {offsets = [16, 0], sizes = [16, 128], strides = [1, 1]} : vector<48x128xf32> to vector<16x128xf32>
    %64 = vector.extract_strided_slice %49 {offsets = [32, 0], sizes = [16, 128], strides = [1, 1]} : vector<48x128xf32> to vector<16x128xf32>
    %cst_26 = arith.constant 0.000000e+00 : f32
    %65 = vector.shape_cast %20 : vector<16x1xi1> to vector<16x1xi1>
    %66 = vector.broadcast %65 : vector<16x1xi1> to vector<16x128xi1>
    %67 = vector.broadcast %cst_26 : f32 to vector<16x128xf32>
    %68 = arith.select %66, %67, %64 : vector<16x128xi1>, vector<16x128xf32>
    %69 = vector.extract_strided_slice %61 {offsets = [0, 0], sizes = [16, 128], strides = [1, 1]} : vector<48x128xf32> to vector<16x128xf32>
    %cst_27 = arith.constant 0.000000e+00 : f32
    %70 = vector.shape_cast %18 : vector<16x1xi1> to vector<16x1xi1>
    %71 = vector.broadcast %70 : vector<16x1xi1> to vector<16x128xi1>
    %72 = vector.broadcast %cst_27 : f32 to vector<16x128xf32>
    %73 = arith.select %71, %72, %69 : vector<16x128xi1>, vector<16x128xf32>
    %74 = vector.extract_strided_slice %61 {offsets = [16, 0], sizes = [16, 128], strides = [1, 1]} : vector<48x128xf32> to vector<16x128xf32>
    %75 = vector.extract_strided_slice %61 {offsets = [32, 0], sizes = [16, 128], strides = [1, 1]} : vector<48x128xf32> to vector<16x128xf32>
    %76 = arith.truncf %73 : vector<16x128xf32> to vector<16x128xbf16>
    %77 = arith.truncf %62 : vector<16x128xf32> to vector<16x128xbf16>
    %78 = arith.truncf %74 : vector<16x128xf32> to vector<16x128xbf16>
    %79 = arith.truncf %63 : vector<16x128xf32> to vector<16x128xbf16>
    %80 = arith.truncf %75 : vector<16x128xf32> to vector<16x128xbf16>
    %81 = arith.truncf %68 : vector<16x128xf32> to vector<16x128xbf16>
    %82 = tpu.concatenate %76, %77, %78, %79, %80, %81 in 0 : vector<16x128xbf16>, vector<16x128xbf16>, vector<16x128xbf16>, vector<16x128xbf16>, vector<16x128xbf16>, vector<16x128xbf16> -> vector<96x128xbf16>
    %83 = vector.extract_strided_slice %82 {offsets = [32, 0], sizes = [64, 128], strides = [1, 1]} : vector<96x128xbf16> to vector<64x128xbf16>
    %c0_28 = arith.constant 0 : index
    %c0_29 = arith.constant 0 : index
    %84 = vector.load %arg8[%c0_28, %c0_29] : memref<128x256xbf16, #tpu.memory_space<vmem>>, vector<128x256xbf16>
    %cst_30 = arith.constant dense<0.000000e+00> : vector<64x256xf32>
    %85 = tpu.matmul %83, %84, %cst_30 {dimension_numbers = #tpu.dot_dimension_numbers<[1], [0], [0], [1], [0, 0, 1, 1], [], []>} : vector<64x128xbf16>, vector<128x256xbf16>, vector<64x256xf32> -> vector<64x256xf32>
    %86 = vector.extract_strided_slice %82 {offsets = [16, 0], sizes = [64, 128], strides = [1, 1]} : vector<96x128xbf16> to vector<64x128xbf16>
    %c0_31 = arith.constant 0 : index
    %c0_32 = arith.constant 0 : index
    %87 = vector.load %arg9[%c0_31, %c0_32] : memref<128x256xbf16, #tpu.memory_space<vmem>>, vector<128x256xbf16>
    %cst_33 = arith.constant dense<0.000000e+00> : vector<64x256xf32>
    %88 = tpu.matmul %86, %87, %cst_33 {dimension_numbers = #tpu.dot_dimension_numbers<[1], [0], [0], [1], [0, 0, 1, 1], [], []>} : vector<64x128xbf16>, vector<128x256xbf16>, vector<64x256xf32> -> vector<64x256xf32>
    %89 = arith.addf %85, %88 : vector<64x256xf32>
    %90 = vector.extract_strided_slice %82 {offsets = [0, 0], sizes = [64, 128], strides = [1, 1]} : vector<96x128xbf16> to vector<64x128xbf16>
    %c0_34 = arith.constant 0 : index
    %c0_35 = arith.constant 0 : index
    %91 = vector.load %arg10[%c0_34, %c0_35] : memref<128x256xbf16, #tpu.memory_space<vmem>>, vector<128x256xbf16>
    %cst_36 = arith.constant dense<0.000000e+00> : vector<64x256xf32>
    %92 = tpu.matmul %90, %91, %cst_36 {dimension_numbers = #tpu.dot_dimension_numbers<[1], [0], [0], [1], [0, 0, 1, 1], [], []>} : vector<64x128xbf16>, vector<128x256xbf16>, vector<64x256xf32> -> vector<64x256xf32>
    %93 = arith.addf %89, %92 : vector<64x256xf32>
    %c0_37 = arith.constant 0 : index
    %c0_38 = arith.constant 0 : index
    %94 = vector.load %arg11[%c0_37, %c0_38] : memref<1x256xf32, #tpu.memory_space<vmem>>, vector<1x256xf32>
    %95 = vector.broadcast %94 : vector<1x256xf32> to vector<64x256xf32>
    %96 = arith.addf %93, %95 : vector<64x256xf32>
    %cst_39 = arith.constant 0.000000e+00 : f32
    %97 = vector.broadcast %cst_39 : f32 to vector<64x256xf32>
    %98 = arith.maximumf %96, %97 : vector<64x256xf32>
    %99 = arith.truncf %98 : vector<64x256xf32> to vector<64x256xbf16>
    %c0_40 = arith.constant 0 : index
    %c0_41 = arith.constant 0 : index
    %100 = vector.load %arg12[%c0_40, %c0_41] : memref<256x128xbf16, #tpu.memory_space<vmem>>, vector<256x128xbf16>
    %cst_42 = arith.constant dense<0.000000e+00> : vector<64x128xf32>
    %101 = tpu.matmul %99, %100, %cst_42 {dimension_numbers = #tpu.dot_dimension_numbers<[1], [0], [0], [1], [0, 0, 1, 1], [], []>} : vector<64x256xbf16>, vector<256x128xbf16>, vector<64x128xf32> -> vector<64x128xf32>
    %c0_43 = arith.constant 0 : index
    %c0_44 = arith.constant 0 : index
    %102 = vector.load %arg13[%c0_43, %c0_44] : memref<1x128xf32, #tpu.memory_space<vmem>>, vector<1x128xf32>
    %103 = vector.broadcast %102 : vector<1x128xf32> to vector<64x128xf32>
    %104 = arith.addf %101, %103 : vector<64x128xf32>
    %cst_45 = arith.constant 0.000000e+00 : f32
    %105 = vector.broadcast %cst_45 : f32 to vector<64x128xf32>
    %106 = arith.maximumf %104, %105 : vector<64x128xf32>
    %107 = arith.truncf %106 : vector<64x128xf32> to vector<64x128xbf16>
    %c0_46 = arith.constant 0 : index
    %c0_47 = arith.constant 0 : index
    %108 = vector.load %arg14[%c0_46, %c0_47] : memref<128x64xbf16, #tpu.memory_space<vmem>>, vector<128x64xbf16>
    %cst_48 = arith.constant dense<0.000000e+00> : vector<64x64xf32>
    %109 = tpu.matmul %107, %108, %cst_48 {dimension_numbers = #tpu.dot_dimension_numbers<[1], [0], [0], [1], [0, 0, 1, 1], [], []>} : vector<64x128xbf16>, vector<128x64xbf16>, vector<64x64xf32> -> vector<64x64xf32>
    %c0_49 = arith.constant 0 : index
    %c0_50 = arith.constant 0 : index
    %110 = vector.load %arg15[%c0_49, %c0_50] : memref<1x64xf32, #tpu.memory_space<vmem>>, vector<1x64xf32>
    %111 = vector.broadcast %110 : vector<1x64xf32> to vector<64x64xf32>
    %112 = arith.addf %109, %111 : vector<64x64xf32>
    %cst_51 = arith.constant 0.000000e+00 : f32
    %113 = vector.broadcast %cst_51 : f32 to vector<64x64xf32>
    %114 = arith.maximumf %112, %113 : vector<64x64xf32>
    %115 = arith.truncf %114 : vector<64x64xf32> to vector<64x64xbf16>
    %c0_52 = arith.constant 0 : index
    %c0_53 = arith.constant 0 : index
    %116 = vector.load %arg16[%c0_52, %c0_53] : memref<64x128xbf16, #tpu.memory_space<vmem>>, vector<64x128xbf16>
    %cst_54 = arith.constant dense<0.000000e+00> : vector<64x128xf32>
    %117 = tpu.matmul %115, %116, %cst_54 {dimension_numbers = #tpu.dot_dimension_numbers<[1], [0], [0], [1], [0, 0, 1, 1], [], []>} : vector<64x64xbf16>, vector<64x128xbf16>, vector<64x128xf32> -> vector<64x128xf32>
    %c0_55 = arith.constant 0 : index
    %c0_56 = arith.constant 0 : index
    %118 = vector.load %arg17[%c0_55, %c0_56] : memref<1x128xf32, #tpu.memory_space<vmem>>, vector<1x128xf32>
    %119 = vector.broadcast %118 : vector<1x128xf32> to vector<64x128xf32>
    %120 = arith.addf %117, %119 : vector<64x128xf32>
    %121 = vector.shape_cast %120 : vector<64x128xf32> to vector<4x16x128xf32>
    %c0_57 = arith.constant 0 : index
    %c0_58 = arith.constant 0 : index
    %c0_59 = arith.constant 0 : index
    %122 = vector.load %arg18[%c0_57, %c0_58, %c0_59] : memref<4x16x128xf32, #tpu.memory_space<vmem>>, vector<4x16x128xf32>
    tpu.vector_store %arg18[%c0_57, %c0_58, %c0_59], %121 {strides = array<i32>} : memref<4x16x128xf32, #tpu.memory_space<vmem>>, vector<4x16x128xf32>,
    return
  }
  func.func @transform_0(%arg0: i32) -> (i32, i32) {
    %c0_i32 = arith.constant 0 : i32
    %c0_i32_0 = arith.constant 0 : i32
    return %arg0, %c0_i32 : i32, i32
  }
  func.func @transform_1(%arg0: i32) -> (i32, i32) {
    %c0_i32 = arith.constant 0 : i32
    %c0_i32_0 = arith.constant 0 : i32
    %c0_i32_1 = arith.constant 0 : i32
    return %c0_i32, %c0_i32_0 : i32, i32
  }
  func.func @transform_2(%arg0: i32) -> (i32, i32) {
    %c0_i32 = arith.constant 0 : i32
    %c0_i32_0 = arith.constant 0 : i32
    %c0_i32_1 = arith.constant 0 : i32
    return %c0_i32, %c0_i32_0 : i32, i32
  }
  func.func @transform_3(%arg0: i32) -> (i32, i32) {
    %c0_i32 = arith.constant 0 : i32
    %c0_i32_0 = arith.constant 0 : i32
    %c0_i32_1 = arith.constant 0 : i32
    return %c0_i32, %c0_i32_0 : i32, i32
  }
  func.func @transform_4(%arg0: i32) -> (i32, i32) {
    %c0_i32 = arith.constant 0 : i32
    %c0_i32_0 = arith.constant 0 : i32
    %c0_i32_1 = arith.constant 0 : i32
    return %c0_i32, %c0_i32_0 : i32, i32
  }
  func.func @transform_5(%arg0: i32) -> (i32, i32) {
    %c0_i32 = arith.constant 0 : i32
    %c0_i32_0 = arith.constant 0 : i32
    %c0_i32_1 = arith.constant 0 : i32
    return %c0_i32, %c0_i32_0 : i32, i32
  }
  func.func @transform_6(%arg0: i32) -> (i32, i32) {
    %c0_i32 = arith.constant 0 : i32
    %c0_i32_0 = arith.constant 0 : i32
    %c0_i32_1 = arith.constant 0 : i32
    return %c0_i32, %c0_i32_0 : i32, i32
  }
  func.func @transform_7(%arg0: i32) -> (i32, i32) {
    %c0_i32 = arith.constant 0 : i32
    %c0_i32_0 = arith.constant 0 : i32
    %c0_i32_1 = arith.constant 0 : i32
    return %c0_i32, %c0_i32_0 : i32, i32
  }
  func.func @transform_8(%arg0: i32) -> (i32, i32) {
    %c0_i32 = arith.constant 0 : i32
    %c0_i32_0 = arith.constant 0 : i32
    %c0_i32_1 = arith.constant 0 : i32
    return %c0_i32, %c0_i32_0 : i32, i32
  }
  func.func @transform_9(%arg0: i32) -> (i32, i32) {
    %c0_i32 = arith.constant 0 : i32
    %c0_i32_0 = arith.constant 0 : i32
    %c0_i32_1 = arith.constant 0 : i32
    return %c0_i32, %c0_i32_0 : i32, i32
  }
  func.func @transform_10(%arg0: i32) -> (i32, i32) {
    %c0_i32 = arith.constant 0 : i32
    %c0_i32_0 = arith.constant 0 : i32
    %c0_i32_1 = arith.constant 0 : i32
    return %c0_i32, %c0_i32_0 : i32, i32
  }
  func.func @transform_11(%arg0: i32) -> (i32, i32) {
    %c0_i32 = arith.constant 0 : i32
    %c0_i32_0 = arith.constant 0 : i32
    %c0_i32_1 = arith.constant 0 : i32
    return %c0_i32, %c0_i32_0 : i32, i32
  }
  func.func @transform_12(%arg0: i32) -> (i32, i32) {
    %c0_i32 = arith.constant 0 : i32
    %c0_i32_0 = arith.constant 0 : i32
    %c0_i32_1 = arith.constant 0 : i32
    return %c0_i32, %c0_i32_0 : i32, i32
  }
  func.func @transform_13(%arg0: i32) -> (i32, i32) {
    %c0_i32 = arith.constant 0 : i32
    %c0_i32_0 = arith.constant 0 : i32
    %c0_i32_1 = arith.constant 0 : i32
    return %c0_i32, %c0_i32_0 : i32, i32
  }
  func.func @transform_14(%arg0: i32) -> (i32, i32) {
    %c0_i32 = arith.constant 0 : i32
    %c0_i32_0 = arith.constant 0 : i32
    %c0_i32_1 = arith.constant 0 : i32
    return %c0_i32, %c0_i32_0 : i32, i32
  }
  func.func @transform_15(%arg0: i32) -> (i32, i32) {
    %c0_i32 = arith.constant 0 : i32
    %c0_i32_0 = arith.constant 0 : i32
    %c0_i32_1 = arith.constant 0 : i32
    return %c0_i32, %c0_i32_0 : i32, i32
  }
  func.func @transform_16(%arg0: i32) -> (i32, i32) {
    %c0_i32 = arith.constant 0 : i32
    %c0_i32_0 = arith.constant 0 : i32
    %c0_i32_1 = arith.constant 0 : i32
    return %c0_i32, %c0_i32_0 : i32, i32
  }
  func.func @transform_17(%arg0: i32) -> (i32, i32, i32) {
    %c0_i32 = arith.constant 0 : i32
    %c0_i32_0 = arith.constant 0 : i32
    %c0_i32_1 = arith.constant 0 : i32
    return %c0_i32, %arg0, %c0_i32_0 : i32, i32, i32
  }
}

</mosaic_0001>

<bundles_post_ra>
// kernel: tpu_custom_call.1
= control target key start
LH: loop header
LB: loop body
LE: loop exit
PB: predicated region body
PF: predicated region fallthrough
CT: control target
= control target key end

     0   :  { %s3743_s0 = inlined_call_operand.hbm [shape: bf16[16,256], index: 0, kind: input, shape index: {}]   ;;  %s3744_s1 = inlined_call_operand.hbm [shape: bf16[256,512], index: 1, kind: input, shape index: {}]   ;;  %s3745_s2 = inlined_call_operand.hbm [shape: f32[1,512], index: 2, kind: input, shape index: {}]   ;;  %s3746_s3 = inlined_call_operand.hbm [shape: bf16[128,128], index: 3, kind: input, shape index: {}]   ;;  %s3747_s4 = inlined_call_operand.hbm [shape: bf16[128,128], index: 4, kind: input, shape index: {}]   ;;  %s3748_s5 = inlined_call_operand.hbm [shape: bf16[128,128], index: 5, kind: input, shape index: {}]   ;;  %s3749_s6 = inlined_call_operand.hbm [shape: f32[1,128], index: 6, kind: input, shape index: {}]   ;;  %s3750_s7 = inlined_call_operand.hbm [shape: bf16[128,256], index: 7, kind: input, shape index: {}]   ;;  %s3751_s8 = inlined_call_operand.hbm [shape: bf16[128,256], index: 8, kind: input, shape index: {}]   ;;  %s3752_s9 = inlined_call_operand.vmem [shape: bf16[128,256], index: 9, kind: input, shape index: {}]   ;;  %s3753_s10 = inlined_call_operand.vmem [shape: f32[1,256], index: 10, kind: input, shape index: {}]   ;;  %s3754_s11 = inlined_call_operand.hbm [shape: bf16[256,128], index: 11, kind: input, shape index: {}]   ;;  %s3755_s12 = inlined_call_operand.vmem [shape: f32[1,128], index: 12, kind: input, shape index: {}]   ;;  %s3756_s13 = inlined_call_operand.vmem [shape: bf16[128,64], index: 13, kind: input, shape index: {}]   ;;  %s3757_s14 = inlined_call_operand.vmem [shape: f32[1,64], index: 14, kind: input, shape index: {}]   ;;  %s3758_s15 = inlined_call_operand.hbm [shape: bf16[64,128], index: 15, kind: input, shape index: {}]   ;;  %s3759_s16 = inlined_call_operand.vmem [shape: f32[1,128], index: 16, kind: input, shape index: {}]   ;;  %s3760_s17 = inlined_call_operand.hbm [shape: f32[4,16,128], index: 17, kind: output, shape index: {}]  }
   0x1   :  { %3764 = sst [smem:[#allocation28_spill]] %s3743_s0 }
   0x2   :  { %3765 = sst [smem:[#allocation29_spill]] %s3744_s1 }
   0x3   :  { %3766 = sst [smem:[#allocation30_spill]] %s3760_s17 }
   0x4   :  { %22 = vsyncpa [#allocation3], 0 }
   0x5   :  { %23 = vsyncpa [#allocation6], 0 }
   0x6   :  { %24 = vsyncpa [#allocation9], 0 }
   0x7   :  { %25 = vsyncpa [#allocation12], 0 }
   0x8   :  { %26 = vsyncpa [#allocation15], 0 }
   0x9   :  { %27 = vsyncpa [#allocation18], 0 }
   0xa   :  { %28 = vsyncpa [#allocation4], 0  ;;  %s3209_s24 = smov [#allocation5]   ;;  %s3767_s28 = sld [smem:[#allocation29_spill]] }
   0xb   :  { %s46_s25 = sshll.u32 %s3209_s24, 4  ;;  %s47_s25 = int_to_ptr.vmem [resolvable:$true] %s46_s25 }
  0x10   :  { %s2931_s29 = scalar_lea.hbm %s3767_s28, 8192 }
  0x11   :  { %p2932_p0 = scmp.ne.s32.totalorder %s3767_s28, %s2931_s29  ;;  %p2935_p1 = scmp.lt.u32.totalorder %s2931_s29, %s3767_s28 }
  0x13   :  { %p2937_p2 = pnand %p2935_p1, %p2932_p0 }
  0x15   :  { %2940 = shalt.err (!%p2937_p2)
}
  0x16   :  { %s2941_s1 = scalar_lea.vmem %s47_s25, 8192  ;;  %p2946_p4 = scmp.lt.s32.totalorder %s47_s25, %s47_s25 }
  0x17   :  { %p2942_p3 = scmp.ne.s32.totalorder %s47_s25, %s2941_s1  ;;  %p2947_p5 = scmp.lt.s32.totalorder %s2941_s1, %s2941_s1 }
  0x19   :  { %p2948_p6 = por %p2947_p5, %p2946_p4 }
  0x1b   :  { %p2949_p7 = pnand %p2948_p6, %p2942_p3 }
  0x1d   :  { %2952 = shalt.err (!%p2949_p7)
}
  0x1e   :  { %s3210_s20 = smov 256   ;;  %s3211_s21 = smov 16  }
  0x1f   :  { %52 = dma.hbm_to_vmem [thread:$0]  %s3767_s28, 8192, %s47_s25, [#allocation6], %s3210_s20, %s3210_s20, %s3211_s21  }
  0x20   :  { %s3212_s24 = smov [#allocation8]   ;;  %s2953_s0 = scalar_lea.hbm %s3746_s3, 1024 }
  0x21   :  { %s68_s26 = sshll.u32 %s3212_s24, 4  ;;  %p2954_p8 = scmp.ne.s32.totalorder %s3746_s3, %s2953_s0  ;;  %s69_s26 = int_to_ptr.vmem [resolvable:$true] %s68_s26 }
  0x22   :  { %p2957_p9 = scmp.lt.u32.totalorder %s2953_s0, %s3746_s3 }
  0x24   :  { %p2959_p10 = pnand %p2957_p9, %p2954_p8 }
  0x26   :  { %2962 = shalt.err (!%p2959_p10)
}
  0x27   :  { %s2963_s17 = scalar_lea.vmem %s69_s26, 1024  ;;  %p2968_p12 = scmp.lt.s32.totalorder %s69_s26, %s69_s26 }
  0x28   :  { %p2964_p11 = scmp.ne.s32.totalorder %s69_s26, %s2963_s17  ;;  %p2969_p13 = scmp.lt.s32.totalorder %s2963_s17, %s2963_s17 }
  0x2a   :  { %p2970_p0 = por %p2969_p13, %p2968_p12 }
  0x2c   :  { %p2971_p1 = pnand %p2970_p0, %p2964_p11 }
  0x2e   :  { %2974 = shalt.err (!%p2971_p1)
}
  0x2f   :  { %s3213_s25 = smov 64   ;;  %s3214_s28 = smov 4  }
  0x30   :  { %74 = dma.hbm_to_vmem [thread:$0]  %s3746_s3, 1024, %s69_s26, [#allocation9], %s3213_s25, %s3213_s25, %s3214_s28  }
  0x31   :  { %s3215_s22 = smov [#allocation11]   ;;  %s2975_s29 = scalar_lea.hbm %s3748_s5, 1024 }
  0x32   :  { %s92_s23 = sshll.u32 %s3215_s22, 4  ;;  %p2976_p2 = scmp.ne.s32.totalorder %s3748_s5, %s2975_s29  ;;  %s93_s23 = int_to_ptr.vmem [resolvable:$true] %s92_s23 }
  0x33   :  { %p2979_p3 = scmp.lt.u32.totalorder %s2975_s29, %s3748_s5 }
  0x35   :  { %p2981_p4 = pnand %p2979_p3, %p2976_p2 }
  0x37   :  { %2984 = shalt.err (!%p2981_p4)
}
  0x38   :  { %s2985_s19 = scalar_lea.vmem %s93_s23, 1024  ;;  %p2990_p6 = scmp.lt.s32.totalorder %s93_s23, %s93_s23 }
  0x39   :  { %p2986_p5 = scmp.ne.s32.totalorder %s93_s23, %s2985_s19  ;;  %p2991_p7 = scmp.lt.s32.totalorder %s2985_s19, %s2985_s19 }
  0x3b   :  { %p2992_p8 = por %p2991_p7, %p2990_p6 }
  0x3d   :  { %p2993_p9 = pnand %p2992_p8, %p2986_p5 }
  0x3f   :  { %2996 = shalt.err (!%p2993_p9)
}
  0x40   :  { %98 = dma.hbm_to_vmem [thread:$0]  %s3748_s5, 1024, %s93_s23, [#allocation12], %s3213_s25, %s3213_s25, %s3214_s28  }
  0x41   :  { %s3216_s1 = smov [#allocation14]   ;;  %s3217_s21 = smov [#allocation17]  }
  0x42   :  { %s114_s20 = sshll.u32 %s3216_s1, 4  ;;  %s142_s22 = sshll.u32 %s3217_s21, 4  ;;  %s115_s20 = int_to_ptr.vmem [resolvable:$true] %s114_s20  ;;  %s143_s22 = int_to_ptr.vmem [resolvable:$true] %s142_s22 }
  0x43   :  { %s2997_s29 = scalar_lea.hbm %s3750_s7, 2048 }
  0x44   :  { %p2998_p10 = scmp.ne.s32.totalorder %s3750_s7, %s2997_s29  ;;  %p3001_p11 = scmp.lt.u32.totalorder %s2997_s29, %s3750_s7 }
  0x46   :  { %p3003_p12 = pnand %p3001_p11, %p2998_p10 }
  0x48   :  { %3006 = shalt.err (!%p3003_p12)
}
  0x49   :  { %s3007_s5 = scalar_lea.vmem %s115_s20, 2048  ;;  %p3012_p0 = scmp.lt.s32.totalorder %s115_s20, %s115_s20 }
  0x4a   :  { %p3008_p13 = scmp.ne.s32.totalorder %s115_s20, %s3007_s5  ;;  %p3013_p1 = scmp.lt.s32.totalorder %s3007_s5, %s3007_s5 }
  0x4c   :  { %p3014_p2 = por %p3013_p1, %p3012_p0 }
  0x4e   :  { %p3015_p3 = pnand %p3014_p2, %p3008_p13 }
  0x50   :  { %3018 = shalt.err (!%p3015_p3)
}
  0x51   :  { %s3218_s23 = smov 128   ;;  %s3219_s19 = smov 8  }
  0x52   :  { %120 = dma.hbm_to_vmem [thread:$0]  %s3750_s7, 2048, %s115_s20, [#allocation15], %s3218_s23, %s3218_s23, %s3219_s19  }
  0x53   :  { %s3019_s24 = scalar_lea.hbm %s3754_s11, 2048 }
  0x54   :  { %p3020_p4 = scmp.ne.s32.totalorder %s3754_s11, %s3019_s24  ;;  %p3023_p5 = scmp.lt.u32.totalorder %s3019_s24, %s3754_s11 }
  0x56   :  { %p3025_p6 = pnand %p3023_p5, %p3020_p4 }
  0x58   :  { %3028 = shalt.err (!%p3025_p6)
}
  0x59   :  { %s3029_s30 = scalar_lea.vmem %s143_s22, 2048  ;;  %p3034_p8 = scmp.lt.s32.totalorder %s143_s22, %s143_s22 }
  0x5a   :  { %p3030_p7 = scmp.ne.s32.totalorder %s143_s22, %s3029_s30  ;;  %p3035_p9 = scmp.lt.s32.totalorder %s3029_s30, %s3029_s30 }
  0x5c   :  { %p3036_p10 = por %p3035_p9, %p3034_p8 }
  0x5e   :  { %p3037_p11 = pnand %p3036_p10, %p3030_p7 }
  0x60   :  { %3040 = shalt.err (!%p3037_p11)
}
  0x61   :  { %148 = dma.hbm_to_vmem [thread:$0]  %s3754_s11, 2048, %s143_s22, [#allocation18], %s3213_s25, %s3213_s25, %s3214_s28  }
  0x62   :  { %s3220_s18 = smov [#allocation2]   ;;  %s3221_s3 = smov [#allocation7]  }
  0x63   :  { %s34_s5 = sshll.u32 %s3220_s18, 4  ;;  %s59_s26 = sshll.u32 %s3221_s3, 4  ;;  %s35_s5 = int_to_ptr.vmem [resolvable:$true] %s34_s5  ;;  %s60_s26 = int_to_ptr.vmem [resolvable:$true] %s59_s26 }
  0x64   :  { %s3768_s24 = sld [smem:[#allocation28_spill]] }
  0x6a   :  { %s3041_s27 = scalar_lea.hbm %s3768_s24, 256 }
  0x6b   :  { %p3042_p12 = scmp.ne.s32.totalorder %s3768_s24, %s3041_s27  ;;  %p3045_p13 = scmp.lt.u32.totalorder %s3041_s27, %s3768_s24 }
  0x6d   :  { %p3047_p0 = pnand %p3045_p13, %p3042_p12 }
  0x6f   :  { %3050 = shalt.err (!%p3047_p0)
}
  0x70   :  { %s3051_s11 = scalar_lea.vmem %s35_s5, 256  ;;  %p3056_p2 = scmp.lt.s32.totalorder %s35_s5, %s35_s5 }
  0x71   :  { %p3052_p1 = scmp.ne.s32.totalorder %s35_s5, %s3051_s11  ;;  %p3057_p3 = scmp.lt.s32.totalorder %s3051_s11, %s3051_s11 }
  0x73   :  { %p3058_p4 = por %p3057_p3, %p3056_p2 }
  0x75   :  { %p3059_p5 = pnand %p3058_p4, %p3052_p1 }
  0x77   :  { %3062 = shalt.err (!%p3059_p5)
}
  0x78   :  { %40 = dma.hbm_to_vmem [thread:$0]  %s3768_s24, 256, %s35_s5, [#allocation3], %s3218_s23, %s3218_s23, %s3219_s19  }
  0x79   :  { %s3063_s3 = scalar_lea.hbm %s3745_s2, 64 }
  0x7a   :  { %p3064_p6 = scmp.ne.s32.totalorder %s3745_s2, %s3063_s3  ;;  %p3067_p7 = scmp.lt.u32.totalorder %s3063_s3, %s3745_s2 }
  0x7c   :  { %p3069_p8 = pnand %p3067_p7, %p3064_p6 }
  0x7e   :  { %3072 = shalt.err (!%p3069_p8)
}
  0x7f   :  { %s3073_s17 = scalar_lea.vmem %s60_s26, 64  ;;  %p3078_p10 = scmp.lt.s32.totalorder %s60_s26, %s60_s26 }
  0x80   :  { %p3074_p9 = scmp.ne.s32.totalorder %s60_s26, %s3073_s17  ;;  %p3079_p11 = scmp.lt.s32.totalorder %s3073_s17, %s3073_s17 }
  0x82   :  { %p3080_p12 = por %p3079_p11, %p3078_p10 }
  0x84   :  { %p3081_p13 = pnand %p3080_p12, %p3074_p9 }
  0x86   :  { %3084 = shalt.err (!%p3081_p13)
}
  0x87   :  { %62 = dma.hbm_to_vmem [thread:$0]  %s3745_s2, 64, %s60_s26, [#allocation6]  }
  0x88   :  { %s3222_s0 = smov [#allocation10]   ;;  %s3223_s11 = smov [#allocation13]  }
  0x89   :  { %s80_s30 = sshll.u32 %s3222_s0, 4  ;;  %s105_s22 = sshll.u32 %s3223_s11, 4  ;;  %s81_s30 = int_to_ptr.vmem [resolvable:$true] %s80_s30  ;;  %s106_s22 = int_to_ptr.vmem [resolvable:$true] %s105_s22 }
  0x8a   :  { %s3085_s18 = scalar_lea.hbm %s3747_s4, 1024 }
  0x8b   :  { %p3086_p0 = scmp.ne.s32.totalorder %s3747_s4, %s3085_s18  ;;  %p3089_p1 = scmp.lt.u32.totalorder %s3085_s18, %s3747_s4 }
  0x8d   :  { %p3091_p2 = pnand %p3089_p1, %p3086_p0 }
  0x8f   :  { %3094 = shalt.err (!%p3091_p2)
}
  0x90   :  { %s3095_s2 = scalar_lea.vmem %s81_s30, 1024  ;;  %p3100_p4 = scmp.lt.s32.totalorder %s81_s30, %s81_s30 }
  0x91   :  { %p3096_p3 = scmp.ne.s32.totalorder %s81_s30, %s3095_s2  ;;  %p3101_p5 = scmp.lt.s32.totalorder %s3095_s2, %s3095_s2 }
  0x93   :  { %p3102_p6 = por %p3101_p5, %p3100_p4 }
  0x95   :  { %p3103_p7 = pnand %p3102_p6, %p3096_p3 }
  0x97   :  { %3106 = shalt.err (!%p3103_p7)
}
  0x98   :  { %86 = dma.hbm_to_vmem [thread:$0]  %s3747_s4, 1024, %s81_s30, [#allocation9], %s3213_s25, %s3213_s25, %s3214_s28  }
  0x99   :  { %s3107_s24 = scalar_lea.hbm %s3749_s6, 16 }
  0x9a   :  { %p3108_p8 = scmp.ne.s32.totalorder %s3749_s6, %s3107_s24  ;;  %p3111_p9 = scmp.lt.u32.totalorder %s3107_s24, %s3749_s6 }
  0x9c   :  { %p3113_p10 = pnand %p3111_p9, %p3108_p8 }
  0x9e   :  { %3116 = shalt.err (!%p3113_p10)
}
  0x9f   :  { %s3117_s18 = scalar_lea.vmem %s106_s22, 16  ;;  %s3121_s3 = scalar_lea.vmem %s106_s22, 32 }
  0xa0   :  { %p3118_p11 = scmp.ne.s32.totalorder %s106_s22, %s3117_s18  ;;  %p3122_p12 = scmp.lt.s32.totalorder %s106_s22, %s106_s22 }
  0xa1   :  { %p3123_p13 = scmp.lt.s32.totalorder %s3121_s3, %s3117_s18 }
  0xa3   :  { %p3124_p0 = por %p3123_p13, %p3122_p12 }
  0xa5   :  { %p3125_p1 = pnand %p3124_p0, %p3118_p11 }
  0xa7   :  { %3128 = shalt.err (!%p3125_p1)
}
  0xa8   :  { %108 = dma.hbm_to_vmem [thread:$0]  %s3749_s6, 16, %s106_s22, [#allocation12]  }
  0xa9   :  { %s3224_s1 = smov [#allocation16]   ;;  %s3225_s27 = smov [#allocation19]  }
  0xaa   :  { %s126_s21 = sshll.u32 %s3224_s1, 4  ;;  %s160_s2 = sshll.u32 %s3225_s27, 4  ;;  %s127_s21 = int_to_ptr.vmem [resolvable:$true] %s126_s21  ;;  %s161_s2 = int_to_ptr.vmem [resolvable:$true] %s160_s2 }
  0xab   :  { %s3129_s17 = scalar_lea.hbm %s3751_s8, 2048 }
  0xac   :  { %p3130_p2 = scmp.ne.s32.totalorder %s3751_s8, %s3129_s17  ;;  %p3133_p3 = scmp.lt.u32.totalorder %s3129_s17, %s3751_s8 }
  0xae   :  { %p3135_p4 = pnand %p3133_p3, %p3130_p2 }
  0xb0   :  { %3138 = shalt.err (!%p3135_p4)
}
  0xb1   :  { %s3139_s6 = scalar_lea.vmem %s127_s21, 2048  ;;  %p3144_p6 = scmp.lt.s32.totalorder %s127_s21, %s127_s21 }
  0xb2   :  { %p3140_p5 = scmp.ne.s32.totalorder %s127_s21, %s3139_s6  ;;  %p3145_p7 = scmp.lt.s32.totalorder %s3139_s6, %s3139_s6 }
  0xb4   :  { %p3146_p8 = por %p3145_p7, %p3144_p6 }
  0xb6   :  { %p3147_p9 = pnand %p3146_p8, %p3140_p5 }
  0xb8   :  { %3150 = shalt.err (!%p3147_p9)
}
  0xb9   :  { %132 = dma.hbm_to_vmem [thread:$0]  %s3751_s8, 2048, %s127_s21, [#allocation15], %s3218_s23, %s3218_s23, %s3219_s19  }
  0xba   :  { %s3151_s3 = scalar_lea.hbm %s3758_s15, 512 }
  0xbb   :  { %p3152_p10 = scmp.ne.s32.totalorder %s3758_s15, %s3151_s3  ;;  %p3155_p11 = scmp.lt.u32.totalorder %s3151_s3, %s3758_s15 }
  0xbd   :  { %p3157_p12 = pnand %p3155_p11, %p3152_p10 }
  0xbf   :  { %3160 = shalt.err (!%p3157_p12)
}
  0xc0   :  { %s3161_s26 = scalar_lea.vmem %s161_s2, 512  ;;  %p3166_p0 = scmp.lt.s32.totalorder %s161_s2, %s161_s2 }
  0xc1   :  { %p3162_p13 = scmp.ne.s32.totalorder %s161_s2, %s3161_s26  ;;  %p3167_p1 = scmp.lt.s32.totalorder %s3161_s26, %s3161_s26 }
  0xc3   :  { %p3168_p2 = por %p3167_p1, %p3166_p0 }
  0xc5   :  { %p3169_p3 = pnand %p3168_p2, %p3162_p13 }
  0xc7   :  { %3172 = shalt.err (!%p3169_p3)
}
  0xc8   :  { %166 = dma.hbm_to_vmem [thread:$0]  %s3758_s15, 512, %s161_s2, [#allocation18], %s3213_s25, %s3213_s25, %s3214_s28  }
  0xc9   :  { %3195 = dma.done.wait [#allocation3], 256  }
  0xca   :  { %3196 = vsyncadd [#allocation3], 4294967040 }
  0xcb   :  { %3197 = dma.done.wait [#allocation6], 8256  }
  0xcc   :  { %3198 = vsyncadd [#allocation6], 4294959040 }
  0xcd   :  { %3199 = dma.done.wait [#allocation9], 2048  }
  0xce   :  { %3200 = vsyncadd [#allocation9], 4294965248 }
  0xcf   :  { %3201 = dma.done.wait [#allocation12], 1040  }
  0xd0   :  { %3202 = vsyncadd [#allocation12], 4294966256 }
  0xd1   :  { %3203 = dma.done.wait [#allocation15], 4096  }
  0xd2   :  { %3204 = vsyncadd [#allocation15], 4294963200 }
  0xd3   :  { %3205 = dma.done.wait [#allocation18], 2560  }
  0xd4   :  { %3206 = vsyncadd [#allocation18], 4294964736  ;;  %v2708_v0 = vld [vmem:[#allocation5 + $0x4] ss:$16 sps:$4 sm:$0xff]   ;;  %v2710_v1 = vld [vmem:[#allocation5] ss:$16 sps:$4 sm:$0xff]  }
  0xd5   :  { %652 = vmatprep.subr.bf16.mxu0 %v2708_v0  ;;  %v2711_v2 = vld [vmem:[#allocation5 + $0x24] ss:$16 sps:$4 sm:$0xff]   ;;  %v2713_v3 = vld [vmem:[#allocation5 + $0x20] ss:$16 sps:$4 sm:$0xff]   ;;  %v2723_v6 = vld [vmem:[#allocation5 + $0xc] ss:$16 sps:$4 sm:$0xff]  }
  0xd6   :  { %653 = vmatpush1.bf16.msra.mxu0 %v2710_v1  ;;  %v2714_v4 = vld [vmem:[#allocation5 + $0x44] ss:$16 sps:$4 sm:$0xff]   ;;  %v2716_v5 = vld [vmem:[#allocation5 + $0x40] ss:$16 sps:$4 sm:$0xff]   ;;  %v2725_v7 = vld [vmem:[#allocation5 + $0x8] ss:$16 sps:$4 sm:$0xff]   ;;  %695 = vmatprep.subr.bf16.mxu1 %v2723_v6 }
  0xd7   :  { %654 = vmatprep.subr.bf16.mxu0 %v2711_v2  ;;  %v2717_v8 = vld [vmem:[#allocation5 + $0x64] ss:$16 sps:$4 sm:$0xff]   ;;  %696 = vmatpush1.bf16.msra.mxu1 %v2725_v7  ;;  %v2729_v9 = vld [vmem:[#allocation5 + $0x2c] ss:$16 sps:$4 sm:$0xff]   ;;  %v2731_v10 = vld [vmem:[#allocation5 + $0x28] ss:$16 sps:$4 sm:$0xff]  }
  0xd8   :  { %v2719_v11 = vld [vmem:[#allocation5 + $0x60] ss:$16 sps:$4 sm:$0xff]   ;;  %v2720_v12 = vld [vmem:[#allocation5 + $0x84] ss:$16 sps:$4 sm:$0xff]   ;;  %697 = vmatprep.subr.bf16.mxu1 %v2729_v9  ;;  %v2735_v13 = vld [vmem:[#allocation5 + $0x4c] ss:$16 sps:$4 sm:$0xff]  }
  0xd9   :  { %v2737_v14 = vld [vmem:[#allocation5 + $0x48] ss:$16 sps:$4 sm:$0xff]   ;;  %v2722_v15 = vld [vmem:[#allocation5 + $0x80] ss:$16 sps:$4 sm:$0xff]   ;;  %v2741_v16 = vld [vmem:[#allocation5 + $0x6c] ss:$16 sps:$4 sm:$0xff]  }
  0xda   :  { %655 = vmatpush1.bf16.msra.mxu0 %v2713_v3  ;;  %v2726_v17 = vld [vmem:[#allocation5 + $0xa4] ss:$16 sps:$4 sm:$0xff]   ;;  %v2743_v18 = vld [vmem:[#allocation5 + $0x68] ss:$16 sps:$4 sm:$0xff]   ;;  %v2728_v19 = vld [vmem:[#allocation5 + $0xa0] ss:$16 sps:$4 sm:$0xff]  }
  0xdb   :  { %656 = vmatprep.subr.bf16.mxu0 %v2714_v4  ;;  %698 = vmatpush1.bf16.msra.mxu1 %v2731_v10  ;;  %v2747_v20 = vld [vmem:[#allocation5 + $0x8c] ss:$16 sps:$4 sm:$0xff]   ;;  %v2732_v21 = vld [vmem:[#allocation5 + $0xc4] ss:$16 sps:$4 sm:$0xff]   ;;  %v2749_v22 = vld [vmem:[#allocation5 + $0x88] ss:$16 sps:$4 sm:$0xff]  }
  0xdc   :  { %699 = vmatprep.subr.bf16.mxu1 %v2735_v13  ;;  %v2734_v23 = vld [vmem:[#allocation5 + $0xc0] ss:$16 sps:$4 sm:$0xff]   ;;  %v2753_v24 = vld [vmem:[#allocation5 + $0xac] ss:$16 sps:$4 sm:$0xff]   ;;  %v2738_v25 = vld [vmem:[#allocation5 + $0xe4] ss:$16 sps:$4 sm:$0xff]  }
  0xdd   :  { %v2755_v26 = vld [vmem:[#allocation5 + $0xa8] ss:$16 sps:$4 sm:$0xff]   ;;  %v2740_v27 = vld [vmem:[#allocation5 + $0xe0] ss:$16 sps:$4 sm:$0xff]   ;;  %v2759_v28 = vld [vmem:[#allocation5 + $0xcc] ss:$16 sps:$4 sm:$0xff]  }
  0xde   :  { %657 = vmatpush1.bf16.msra.mxu0 %v2716_v5  ;;  %v2744_v29 = vld [vmem:[#allocation5 + $0x104] ss:$16 sps:$4 sm:$0xff]   ;;  %v2761_v30 = vld [vmem:[#allocation5 + $0xc8] ss:$16 sps:$4 sm:$0xff]   ;;  %v2746_v31 = vld [vmem:[#allocation5 + $0x100] ss:$16 sps:$4 sm:$0xff]  }
  0xdf   :  { %658 = vmatprep.subr.bf16.mxu0 %v2717_v8  ;;  %700 = vmatpush1.bf16.msra.mxu1 %v2737_v14  ;;  %v2765_v32 = vld [vmem:[#allocation5 + $0xec] ss:$16 sps:$4 sm:$0xff]   ;;  %v2750_v33 = vld [vmem:[#allocation5 + $0x124] ss:$16 sps:$4 sm:$0xff]   ;;  %v2767_v34 = vld [vmem:[#allocation5 + $0xe8] ss:$16 sps:$4 sm:$0xff]  }
  0xe0   :  { %701 = vmatprep.subr.bf16.mxu1 %v2741_v16  ;;  %v2752_v35 = vld [vmem:[#allocation5 + $0x120] ss:$16 sps:$4 sm:$0xff]   ;;  %v2771_v36 = vld [vmem:[#allocation5 + $0x10c] ss:$16 sps:$4 sm:$0xff]   ;;  %v2756_v37 = vld [vmem:[#allocation5 + $0x144] ss:$16 sps:$4 sm:$0xff]  }
  0xe1   :  { %v2773_v38 = vld [vmem:[#allocation5 + $0x108] ss:$16 sps:$4 sm:$0xff]   ;;  %v2793_v39 = vld [vmem:[#allocation2 + $0x4] ss:$8 sps:$4 sm:$0xff]   ;;  %v2758_v40 = vld [vmem:[#allocation5 + $0x140] ss:$16 sps:$4 sm:$0xff]  }
  0xe2   :  { %659 = vmatpush1.bf16.msra.mxu0 %v2719_v11  ;;  %v2777_v41 = vld [vmem:[#allocation5 + $0x12c] ss:$16 sps:$4 sm:$0xff]   ;;  %v2762_v42 = vld [vmem:[#allocation5 + $0x164] ss:$16 sps:$4 sm:$0xff]   ;;  %684 = vmatprep.mubr.bf16.mxu0 %v2793_v39  ;;  %v2779_v43 = vld [vmem:[#allocation5 + $0x128] ss:$16 sps:$4 sm:$0xff]  }
  0xe3   :  { %660 = vmatprep.subr.bf16.mxu0 %v2720_v12  ;;  %702 = vmatpush1.bf16.msra.mxu1 %v2743_v18  ;;  %v2764_v44 = vld [vmem:[#allocation5 + $0x160] ss:$16 sps:$4 sm:$0xff]   ;;  %v2783_v45 = vld [vmem:[#allocation5 + $0x14c] ss:$16 sps:$4 sm:$0xff]   ;;  %v2768_v46 = vld [vmem:[#allocation5 + $0x184] ss:$16 sps:$4 sm:$0xff]  }
  0xe4   :  { %703 = vmatprep.subr.bf16.mxu1 %v2747_v20  ;;  %727 = vmatprep.mubr.bf16.mxu1 %v2793_v39  ;;  %v2770_v47 = vld [vmem:[#allocation5 + $0x180] ss:$16 sps:$4 sm:$0xff]   ;;  %v2785_v48 = vld [vmem:[#allocation5 + $0x148] ss:$16 sps:$4 sm:$0xff]   ;;  %v2789_v49 = vld [vmem:[#allocation5 + $0x16c] ss:$16 sps:$4 sm:$0xff]   ;;  %v203_v20 = vlaneseq }
  0xe5   :  { %v2774_v50 = vld [vmem:[#allocation5 + $0x1a4] ss:$16 sps:$4 sm:$0xff]   ;;  %v2776_v51 = vld [vmem:[#allocation5 + $0x1a0] ss:$16 sps:$4 sm:$0xff]   ;;  %v2794_v52 = vld [vmem:[#allocation5 + $0x168] ss:$16 sps:$4 sm:$0xff]  }
  0xe6   :  { %661 = vmatpush1.bf16.msra.mxu0 %v2722_v15  ;;  %v2795_v53 = vld [vmem:[#allocation5 + $0x18c] ss:$16 sps:$4 sm:$0xff]   ;;  %v2780_v54 = vld [vmem:[#allocation5 + $0x1c4] ss:$16 sps:$4 sm:$0xff]   ;;  %v2782_v55 = vld [vmem:[#allocation5 + $0x1c0] ss:$16 sps:$4 sm:$0xff]  }
  0xe7   :  { %662 = vmatprep.subr.bf16.mxu0 %v2726_v17  ;;  %704 = vmatpush1.bf16.msra.mxu1 %v2749_v22  ;;  %v2786_v56 = vld [vmem:[#allocation5 + $0x1e4] ss:$16 sps:$4 sm:$0xff]   ;;  %v2797_v57 = vld [vmem:[#allocation5 + $0x188] ss:$16 sps:$4 sm:$0xff]   ;;  %v2798_v58 = vld [vmem:[#allocation5 + $0x1ac] ss:$16 sps:$4 sm:$0xff]  }
  0xe8   :  { %705 = vmatprep.subr.bf16.mxu1 %v2753_v24  ;;  %v2800_v59 = vld [vmem:[#allocation5 + $0x1a8] ss:$16 sps:$4 sm:$0xff]   ;;  %v2788_v60 = vld [vmem:[#allocation5 + $0x1e0] ss:$16 sps:$4 sm:$0xff]   ;;  %v2801_v61 = vld [vmem:[#allocation5 + $0x1cc] ss:$16 sps:$4 sm:$0xff]  }
  0xe9   :  { %v2791_v62 = vld [vmem:[#allocation2] ss:$8 sps:$4 sm:$0xff]   ;;  %v2804_v0 = vld [vmem:[#allocation5 + $0x1ec] ss:$16 sps:$4 sm:$0xff]   ;;  %v2807_v1 = vld [vmem:[#allocation10] sm:$0xff]   ;;  %v3226_v3 = vmov 0.0  }
  0xea   :  { %663 = vmatpush1.bf16.msra.mxu0 %v2728_v19  ;;  %v2803_v63 = vld [vmem:[#allocation5 + $0x1c8] ss:$16 sps:$4 sm:$0xff]   ;;  %v2809_v4 = vld [vmem:[#allocation10 + $0x8] sm:$0xff]   ;;  %v2813_v8 = vld [vmem:[#allocation10 + $0x18] sm:$0xff]   ;;  %vm3227_vm0 = vmmov 0   ;;  %vm2132_vm7 = vcmask 523264  }
  0xeb   :  { %664 = vmatprep.subr.bf16.mxu0 %v2732_v21  ;;  %706 = vmatpush1.bf16.msra.mxu1 %v2755_v26  ;;  %v2806_v2 = vld [vmem:[#allocation5 + $0x1e8] ss:$16 sps:$4 sm:$0xff]   ;;  %v2810_v7 = vld [vmem:[#allocation8 + $0x8] sm:$0xff]   ;;  %v2814_v11 = vld [vmem:[#allocation8 + $0x18] sm:$0xff]   ;;  %v3497_v21 = vshrl.u32 %v203_v20, 7  ;;  %s3229_s17 = smov [#allocation20]  }
  0xec   :  { %707 = vmatprep.subr.bf16.mxu1 %v2759_v28  ;;  %v2808_v5 = vld [vmem:[#allocation8] sm:$0xff]   ;;  %v2811_v6 = vld [vmem:[#allocation10 + $0x10] sm:$0xff]   ;;  %v2817_v12 = vld [vmem:[#allocation10 + $0x28] sm:$0xff]   ;;  %s2223_s5 = sshll.u32 %s3229_s17, 4  ;;  %s2224_s5 = int_to_ptr.vmem [resolvable:$true] %s2223_s5 }
  0xed   :  { %v2812_v9 = vld [vmem:[#allocation8 + $0x10] sm:$0xff]   ;;  %v2815_v10 = vld [vmem:[#allocation10 + $0x20] sm:$0xff]   ;;  %v2818_v14 = vld [vmem:[#allocation8 + $0x28] sm:$0xff]   ;;  %v304_v22 = vsub.s32 0, %v3497_v21  ;;  %v308_v24 = vsub.s32 1, %v3497_v21  ;;  %v312_v28 = vsub.s32 2, %v3497_v21  ;;  %p3178_p5 = scmp.lt.s32.totalorder %s2224_s5, %s2224_s5 }
  0xee   :  { %665 = vmatpush1.bf16.msra.mxu0 %v2734_v23  ;;  %v2816_v13 = vld [vmem:[#allocation8 + $0x20] sm:$0xff]   ;;  %v2819_v15 = vld [vmem:[#allocation10 + $0x30] sm:$0xff]   ;;  %v2821_v17 = vld [vmem:[#allocation10 + $0x38] sm:$0xff]  }
  0xef   :  { %666 = vmatprep.subr.bf16.mxu0 %v2738_v25  ;;  %708 = vmatpush1.bf16.msra.mxu1 %v2761_v30  ;;  %v2820_v16 = vld [vmem:[#allocation8 + $0x30] sm:$0xff]   ;;  %v2822_v18 = vld [vmem:[#allocation8 + $0x38] sm:$0xff]   ;;  %v2849_v20 = vld [vmem:[#allocation16 + $0x60] ss:$8 sps:$4 sm:$0xff]  }
  0xf0   :  { %709 = vmatprep.subr.bf16.mxu1 %v2765_v32  ;;  %v2833_v19 = vld [vmem:[#allocation16 + $0x4] ss:$8 sps:$4 sm:$0xff]   ;;  %v300_v23 = vld [vmem:[#allocation7] sm:$0xf] }
  0xf1   :  { %v305_v25 = vrot.slane %v300_v23, %v304_v22  ;;  %v309_v26 = vrot.slane %v300_v23, %v308_v24 }
  0xf2   :  { %667 = vmatpush1.bf16.msra.mxu0 %v2740_v27 }
  0xf3   :  { %668 = vmatprep.subr.bf16.mxu0 %v2744_v29  ;;  %710 = vmatpush1.bf16.msra.mxu1 %v2767_v34 }
  0xf4   :  { %711 = vmatprep.subr.bf16.mxu1 %v2771_v36 }
  0xf6   :  { %669 = vmatpush1.bf16.msra.mxu0 %v2746_v31  ;;  %v316_v31 = vsub.s32 3, %v3497_v21 }
  0xf7   :  { %670 = vmatprep.subr.bf16.mxu0 %v2750_v33  ;;  %712 = vmatpush1.bf16.msra.mxu1 %v2773_v38 }
  0xf8   :  { %713 = vmatprep.subr.bf16.mxu1 %v2777_v41 }
  0xfa   :  { %671 = vmatpush1.bf16.msra.mxu0 %v2752_v35 }
  0xfb   :  { %672 = vmatprep.subr.bf16.mxu0 %v2756_v37  ;;  %714 = vmatpush1.bf16.msra.mxu1 %v2779_v43  ;;  %v313_v37 = vrot.slane %v300_v23, %v312_v28  ;;  %v2823_v43 = vld [vmem:[#allocation11] sm:$0xff]  }
  0xfc   :  { %715 = vmatprep.subr.bf16.mxu1 %v2783_v45  ;;  %v2917_v28 = vld [vmem:[#allocation17 + $0x78] sm:$0xff]  }
  0xfe   :  { %673 = vmatpush1.bf16.msra.mxu0 %v2758_v40  ;;  %v317_v40 = vrot.slane %v300_v23, %v316_v31  ;;  %v2854_v23 = vld [vmem:[#allocation16 + $0x74] ss:$8 sps:$4 sm:$0xff]  }
  0xff   :  { %674 = vmatprep.subr.bf16.mxu0 %v2762_v42  ;;  %716 = vmatpush1.bf16.msra.mxu1 %v2785_v48 }
 0x100   :  { %717 = vmatprep.subr.bf16.mxu1 %v2789_v49  ;;  %v2831_v49 = vld [vmem:[#allocation16] ss:$8 sps:$4 sm:$0xff]  }
 0x102   :  { %675 = vmatpush1.bf16.msra.mxu0 %v2764_v44 }
 0x103   :  { %676 = vmatprep.subr.bf16.mxu0 %v2768_v46  ;;  %718 = vmatpush1.bf16.msra.mxu1 %v2794_v52  ;;  %v2836_v52 = vld [vmem:[#allocation16 + $0x14] ss:$8 sps:$4 sm:$0xff]  }
 0x104   :  { %719 = vmatprep.subr.bf16.mxu1 %v2795_v53  ;;  %v2824_v53 = vld [vmem:[#allocation11 + $0x8] sm:$0xff]  }
 0x106   :  { %677 = vmatpush1.bf16.msra.mxu0 %v2770_v47 }
 0x107   :  { %678 = vmatprep.subr.bf16.mxu0 %v2774_v50  ;;  %720 = vmatpush1.bf16.msra.mxu1 %v2797_v57 }
 0x108   :  { %721 = vmatprep.subr.bf16.mxu1 %v2798_v58 }
 0x10a   :  { %679 = vmatpush1.bf16.msra.mxu0 %v2776_v51 }
 0x10b   :  { %680 = vmatprep.subr.bf16.mxu0 %v2780_v54  ;;  %722 = vmatpush1.bf16.msra.mxu1 %v2800_v59  ;;  %v3519_v59 = vadd.s32 8, %v3497_v21 }
 0x10c   :  { %723 = vmatprep.subr.bf16.mxu1 %v2801_v61  ;;  %v2834_v61 = vld [vmem:[#allocation16 + $0x10] ss:$8 sps:$4 sm:$0xff]  }
 0x10e   :  { %681 = vmatpush1.bf16.msra.mxu0 %v2782_v55 }
 0x10f   :  { %682 = vmatprep.subr.bf16.mxu0 %v2786_v56  ;;  %724 = vmatpush1.bf16.msra.mxu1 %v2803_v63  ;;  %v2825_v63 = vld [vmem:[#allocation11 + $0x10] sm:$0xff]  }
 0x110   :  { %725 = vmatprep.subr.bf16.mxu1 %v2804_v0 }
 0x112   :  { %683 = vmatpush1.bf16.msra.mxu0 %v2788_v60 }
 0x113   :  { %2531 = vmatprep.subr.bf16.mxu0 %v3226_v3  ;;  %726 = vmatpush1.bf16.msra.mxu1 %v2806_v2  ;;  %v210_v2 = vand.u32 7, %v3497_v21 }
 0x114   :  { %2559 = vmatprep.subr.bf16.mxu1 %v3226_v3 }
 0x115   :  { %685 = vmatmul.mubr.bf16.vlgmr.msra.gmra.mrb[0].mxu0 %v2791_v62  ;;  %vm2437_vm2 = vcmp.ne.s32.totalorder %v210_v2, 7  ;;  %vm3556_vm5 = vcmp.ne.s32.totalorder %v210_v2, 0  ;;  %v2861_v2 = vld [vmem:[#allocation14 + $0x20] ss:$8 sps:$4 sm:$0xff]  }
 0x116   :  { %2532 = vmatpush3.bf16.msra.mxu0 %v2807_v1  ;;  %728 = vmatmul.mubr.bf16.vlgmr.msra.gmra.mrb[0].mxu1 %v2791_v62 }
 0x117   :  { %2533 = vmatprep.subr.bf16.mxu0 %v3226_v3  ;;  %2560 = vmatpush3.bf16.msra.mxu1 %v2808_v5  ;;  %v2839_v5 = vld [vmem:[#allocation16 + $0x24] ss:$8 sps:$4 sm:$0xff]  }
 0x118   :  { %2561 = vmatprep.subr.bf16.mxu1 %v3226_v3  ;;  %2547 = vmatprep.mubr.msk.bf16.mxu0 %vm3227_vm0, %v3226_v3 }
 0x119   :  { %2575 = vmatprep.mubr.msk.bf16.mxu1 %vm3227_vm0, %v3226_v3 }
 0x11a   :  { %2534 = vmatpush3.bf16.msra.mxu0 %v2809_v4  ;;  %v217_v4 = vand.u32 7, %v3519_v59 }
 0x11b   :  { %2535 = vmatprep.subr.bf16.mxu0 %v3226_v3  ;;  %2562 = vmatpush3.bf16.msra.mxu1 %v2810_v7  ;;  %v2826_v7 = vld [vmem:[#allocation11 + $0x18] sm:$0xff]  }
 0x11c   :  { %2563 = vmatprep.subr.bf16.mxu1 %v3226_v3  ;;  %vm2436_vm1 = vcmp.ne.s32.totalorder %v217_v4, 7  ;;  %vm3552_vm4 = vcmp.ne.s32.totalorder %v217_v4, 0 }
 0x11d   :  { %vm3531_vm3 = vmpackc.low %vm2436_vm1, %vm2437_vm2 }
 0x11e   :  { %2536 = vmatpush3.bf16.msra.mxu0 %v2811_v6  ;;  %v2837_v6 = vld [vmem:[#allocation16 + $0x20] ss:$8 sps:$4 sm:$0xff]   ;;  %vm2396_vm6 = vmpackc.low %vm3552_vm4, %vm3556_vm5 }
 0x11f   :  { %2537 = vmatprep.subr.bf16.mxu0 %v3226_v3  ;;  %2564 = vmatpush3.bf16.msra.mxu1 %v2812_v9  ;;  %v2827_v9 = vld [vmem:[#allocation11 + $0x20] sm:$0xff]  }
 0x120   :  { %2565 = vmatprep.subr.bf16.mxu1 %v3226_v3 }
 0x122   :  { %2538 = vmatpush3.bf16.msra.mxu0 %v2813_v8  ;;  %v2842_v8 = vld [vmem:[#allocation16 + $0x34] ss:$8 sps:$4 sm:$0xff]  }
 0x123   :  { %2539 = vmatprep.subr.bf16.mxu0 %v3226_v3  ;;  %2566 = vmatpush3.bf16.msra.mxu1 %v2814_v11  ;;  %v2840_v11 = vld [vmem:[#allocation16 + $0x30] ss:$8 sps:$4 sm:$0xff]  }
 0x124   :  { %2567 = vmatprep.subr.bf16.mxu1 %v3226_v3 }
 0x126   :  { %2540 = vmatpush3.bf16.msra.mxu0 %v2815_v10  ;;  %v2914_v10 = vld [vmem:[#allocation17 + $0x28] sm:$0xff]  }
 0x127   :  { %2541 = vmatprep.subr.bf16.mxu0 %v3226_v3  ;;  %2568 = vmatpush3.bf16.msra.mxu1 %v2816_v13  ;;  %v2828_v13 = vld [vmem:[#allocation11 + $0x28] sm:$0xff]  }
 0x128   :  { %2569 = vmatprep.subr.bf16.mxu1 %v3226_v3 }
 0x12a   :  { %2542 = vmatpush3.bf16.msra.mxu0 %v2817_v12  ;;  %v2845_v12 = vld [vmem:[#allocation16 + $0x44] ss:$8 sps:$4 sm:$0xff]  }
 0x12b   :  { %2543 = vmatprep.subr.bf16.mxu0 %v3226_v3  ;;  %2570 = vmatpush3.bf16.msra.mxu1 %v2818_v14  ;;  %v2843_v14 = vld [vmem:[#allocation16 + $0x40] ss:$8 sps:$4 sm:$0xff]  }
 0x12c   :  { %2571 = vmatprep.subr.bf16.mxu1 %v3226_v3 }
 0x12e   :  { %2544 = vmatpush3.bf16.msra.mxu0 %v2819_v15  ;;  %v2848_v15 = vld [vmem:[#allocation16 + $0x54] ss:$8 sps:$4 sm:$0xff]  }
 0x12f   :  { %2572 = vmatpush3.bf16.msra.mxu1 %v2820_v16  ;;  %2545 = vmatprep.subr.bf16.mxu0 %v3226_v3  ;;  %v2829_v16 = vld [vmem:[#allocation11 + $0x30] sm:$0xff]  }
 0x130   :  { %2573 = vmatprep.subr.bf16.mxu1 %v3226_v3 }
 0x132   :  { %2546 = vmatpush3.bf16.msra.mxu0 %v2821_v17  ;;  %v2846_v17 = vld [vmem:[#allocation16 + $0x50] ss:$8 sps:$4 sm:$0xff]  }
 0x133   :  { %2574 = vmatpush3.bf16.msra.mxu1 %v2822_v18  ;;  %2587 = vmatprep.subr.bf16.mxu0 %v3226_v3  ;;  %v2830_v18 = vld [vmem:[#allocation11 + $0x38] sm:$0xff]  }
 0x134   :  { %1270 = vmatprep.subr.bf16.mxu1 %v2833_v19  ;;  %v2851_v19 = vld [vmem:[#allocation16 + $0x64] ss:$8 sps:$4 sm:$0xff]  }
 0x1e8   :  { %v686_v27 = vpop.f32.mrb[0].mxu0 }
 0x1e9   :  { %v687_v29 = vadd.f32 %v686_v27, %v305_v25  ;;  %v688_v30 = vpop.f32.mrb[1].mxu0  ;;  %v729_v45 = vpop.f32.mrb[0].mxu1  ;;  %v2857_v27 = vld [vmem:[#allocation14 + $0x4] ss:$8 sps:$4 sm:$0xff]  }
 0x1ea   :  { %v689_v32 = vadd.f32 %v688_v30, %v309_v26  ;;  %v690_v33 = vpop.f32.mrb[2].mxu0  ;;  %v730_v47 = vadd.f32 %v729_v45, %v313_v37  ;;  %v731_v48 = vpop.f32.mrb[1].mxu1  ;;  %v2855_v45 = vld [vmem:[#allocation14] ss:$8 sps:$4 sm:$0xff]  }
 0x1eb   :  { %v691_v34 = vadd.f32 %v690_v33, %v305_v25  ;;  %v692_v35 = vpop.f32.mrb[3].mxu0  ;;  %v738_v38 = vmax.f32 %v687_v29, 0.0  ;;  %v732_v50 = vadd.f32 %v731_v48, %v317_v40  ;;  %v733_v51 = vpop.f32.mrb[2].mxu1  ;;  %v2852_v25 = vld [vmem:[#allocation16 + $0x70] ss:$8 sps:$4 sm:$0xff]   ;;  %v2906_v48 = vld [vmem:[#allocation17 + $0x8] sm:$0xff]  }
 0x1ec   :  { %v693_v36 = vadd.f32 %v692_v35, %v309_v26  ;;  %v739_v41 = vmax.f32 %v689_v32, 0.0  ;;  %v740_v54 = vmax.f32 %v730_v47, 0.0  ;;  %v734_v55 = vadd.f32 %v733_v51, %v313_v37  ;;  %v735_v56 = vpop.f32.mrb[3].mxu1  ;;  %v3564_v29 = vld [vmem:[#allocation13] ss:$0 sm:$0xff]  ;;  %v2907_v51 = vld [vmem:[#allocation17 + $0x50] sm:$0xff]  }
 0x1ed   :  { %v742_v39 = vmax.f32 %v691_v34, 0.0  ;;  %v741_v57 = vmax.f32 %v732_v50, 0.0  ;;  %v736_v58 = vadd.f32 %v735_v56, %v317_v40  ;;  %v3228_v26 = vmov 0   ;;  %v2903_v40 = vld [vmem:[#allocation17 + $0x40] sm:$0xff]   ;;  %v2860_v47 = vld [vmem:[#allocation14 + $0x14] ss:$8 sps:$4 sm:$0xff]  }
 0x1ee   :  { %v743_v42 = vmax.f32 %v693_v36, 0.0  ;;  %v744_v60 = vmax.f32 %v734_v55, 0.0 }
 0x1ef   :  { %v3507_v44 = vpack.c.bf16 %v742_v39, %v738_v38  ;;  %v745_v62 = vmax.f32 %v736_v58, 0.0 }
 0x1f0   :  { %v3509_v46 = vpack.c.bf16 %v743_v42, %v739_v41  ;;  %v2318_v0 = vpack.c.bf16 %v744_v60, %v740_v54  ;;  %v2904_v41 = vld [vmem:[#allocation17] sm:$0xff]   ;;  %v2905_v42 = vld [vmem:[#allocation17 + $0x48] sm:$0xff]  }
 0x1f1   :  { %2548 = vmatmul.mubr.bf16.vlgmr.msra.gmra.mrb[4].mxu0 %v3507_v44  ;;  %2576 = vmatmul.mubr.bf16.vlgmr.msra.gmra.mrb[4].mxu1 %v3507_v44  ;;  %v755_v1 = vpack.c.bf16 %v745_v62, %v741_v57  ;;  %v2858_v57 = vld [vmem:[#allocation14 + $0x10] ss:$8 sps:$4 sm:$0xff]  }
 0x1f2   :  { %2588 = vmatpush3.bf16.msra.mxu0 %v2823_v43  ;;  %2551 = vmatprep.mubr.msk.bf16.mxu0 %vm3227_vm0, %v3226_v3  ;;  %v2908_v62 = vld [vmem:[#allocation17 + $0x10] sm:$0xff]  }
 0x1f3   :  { %2589 = vmatprep.subr.bf16.mxu0 %v3226_v3  ;;  %2579 = vmatprep.mubr.msk.bf16.mxu1 %vm3227_vm0, %v3226_v3 }
 0x1f4   :  { %1271 = vmatpush1.bf16.msra.mxu1 %v2831_v49 }
 0x1f5   :  { %1272 = vmatprep.subr.bf16.mxu1 %v2836_v52 }
 0x1f6   :  { %2590 = vmatpush3.bf16.msra.mxu0 %v2824_v53 }
 0x1f7   :  { %2591 = vmatprep.subr.bf16.mxu0 %v3226_v3 }
 0x1f8   :  { %1273 = vmatpush1.bf16.msra.mxu1 %v2834_v61  ;;  %v2863_v61 = vld [vmem:[#allocation14 + $0x24] ss:$8 sps:$4 sm:$0xff]  }
 0x1f9   :  { %2552 = vmatmul.mubr.bf16.gmra.mrb[8].mxu0 %v3509_v46  ;;  %2580 = vmatmul.mubr.bf16.gmra.mrb[8].mxu1 %v3509_v46 }
 0x1fa   :  { %2592 = vmatpush3.bf16.msra.mxu0 %v2825_v63  ;;  %2555 = vmatprep.mubr.msk.bf16.mxu0 %vm3227_vm0, %v3226_v3  ;;  %v2909_v63 = vld [vmem:[#allocation17 + $0x58] sm:$0xff]  }
 0x1fb   :  { %2593 = vmatprep.subr.bf16.mxu0 %v3226_v3  ;;  %2583 = vmatprep.mubr.msk.bf16.mxu1 %vm3227_vm0, %v3226_v3 }
 0x1fc   :  { %1274 = vmatprep.subr.bf16.mxu1 %v2839_v5  ;;  %v2866_v5 = vld [vmem:[#allocation14 + $0x34] ss:$8 sps:$4 sm:$0xff]  }
 0x1fd   :  { %1275 = vmatpush1.bf16.msra.mxu1 %v2837_v6  ;;  %v2910_v6 = vld [vmem:[#allocation17 + $0x18] sm:$0xff]  }
 0x1fe   :  { %2594 = vmatpush3.bf16.msra.mxu0 %v2826_v7  ;;  %1276 = vmatprep.subr.bf16.mxu1 %v2842_v8 }
 0x1ff   :  { %2595 = vmatprep.subr.bf16.mxu0 %v3226_v3 }
 0x201   :  { %2556 = vmatmul.mubr.msk.bf16.gmra.mrb[12].mxu0 %vm3531_vm3, %v2318_v0  ;;  %2584 = vmatmul.mubr.msk.bf16.gmra.mrb[12].mxu1 %vm3531_vm3, %v2318_v0 }
 0x202   :  { %2596 = vmatpush3.bf16.msra.mxu0 %v2827_v9  ;;  %2603 = vmatprep.mubr.msk.bf16.mxu0 %vm3227_vm0, %v3226_v3  ;;  %v2911_v9 = vld [vmem:[#allocation17 + $0x60] sm:$0xff]  }
 0x203   :  { %2597 = vmatprep.subr.bf16.mxu0 %v3226_v3  ;;  %1277 = vmatpush1.bf16.msra.mxu1 %v2840_v11 }
 0x204   :  { %1278 = vmatprep.subr.bf16.mxu1 %v2845_v12  ;;  %1302 = vmatprep.mubr.bf16.mxu1 %v3228_v26 }
 0x206   :  { %2598 = vmatpush3.bf16.msra.mxu0 %v2828_v13 }
 0x207   :  { %2599 = vmatprep.subr.bf16.mxu0 %v3226_v3  ;;  %1279 = vmatpush1.bf16.msra.mxu1 %v2843_v14 }
 0x208   :  { %1280 = vmatprep.subr.bf16.mxu1 %v2848_v15 }
 0x20a   :  { %2600 = vmatpush3.bf16.msra.mxu0 %v2829_v16  ;;  %v2864_v16 = vld [vmem:[#allocation14 + $0x30] ss:$8 sps:$4 sm:$0xff]  }
 0x20b   :  { %2601 = vmatprep.subr.bf16.mxu0 %v3226_v3  ;;  %1281 = vmatpush1.bf16.msra.mxu1 %v2846_v17 }
 0x20c   :  { %1282 = vmatprep.subr.bf16.mxu1 %v2851_v19 }
 0x20e   :  { %2602 = vmatpush3.bf16.msra.mxu0 %v2830_v18 }
 0x20f   :  { %1283 = vmatpush1.bf16.msra.mxu1 %v2849_v20  ;;  %2471 = vmatprep.subr.bf16.mxu0 %v2903_v40 }
 0x210   :  { %1284 = vmatprep.subr.bf16.mxu1 %v2854_v23  ;;  %v2869_v23 = vld [vmem:[#allocation14 + $0x44] ss:$8 sps:$4 sm:$0xff]  }
 0x211   :  { %2604 = vmatmul.mubr.bf16.vlgmr.msra.gmra.mrb[16].mxu0 %v755_v1 }
 0x212   :  { %2607 = vmatprep.mubr.msk.bf16.mxu0 %vm3227_vm0, %v3226_v3  ;;  %2472 = vmatpush3.bf16.msra.mxu0 %v2904_v41 }
 0x213   :  { %1285 = vmatpush1.bf16.msra.mxu1 %v2852_v25  ;;  %2473 = vmatprep.subr.bf16.mxu0 %v2905_v42  ;;  %v2912_v25 = vld [vmem:[#allocation17 + $0x20] sm:$0xff]  }
 0x214   :  { %1423 = vmatprep.subr.bf16.mxu1 %v2857_v27  ;;  %v2913_v27 = vld [vmem:[#allocation17 + $0x68] sm:$0xff]  }
 0x216   :  { %2474 = vmatpush3.bf16.msra.mxu0 %v2906_v48 }
 0x217   :  { %2475 = vmatprep.subr.bf16.mxu0 %v2907_v51 }
 0x219   :  { %2608 = vmatmul.mubr.bf16.gmra.mrb[20].mxu0 %v3507_v44 }
 0x21a   :  { %2611 = vmatprep.mubr.msk.bf16.mxu0 %vm3227_vm0, %v3226_v3  ;;  %2476 = vmatpush3.bf16.msra.mxu0 %v2908_v62  ;;  %v2918_v3 = vld [vmem:[#allocation17 + $0x38] sm:$0xff]  }
 0x21b   :  { %2477 = vmatprep.subr.bf16.mxu0 %v2909_v63 }
 0x21e   :  { %2478 = vmatpush3.bf16.msra.mxu0 %v2910_v6 }
 0x21f   :  { %2479 = vmatprep.subr.bf16.mxu0 %v2911_v9 }
 0x221   :  { %2612 = vmatmul.mubr.bf16.gmra.mrb[24].mxu0 %v3509_v46 }
 0x222   :  { %2480 = vmatpush3.bf16.msra.mxu0 %v2912_v25  ;;  %v2894_v25 = vld [vmem:[%s3752_s9 + $0x50] ss:$8 sps:$4 sm:$0xff]  }
 0x223   :  { %2481 = vmatprep.subr.bf16.mxu0 %v2913_v27  ;;  %v2899_v27 = vld [vmem:[%s3752_s9 + $0x64] ss:$8 sps:$4 sm:$0xff]  }
 0x226   :  { %2482 = vmatpush3.bf16.msra.mxu0 %v2914_v10 }
 0x2c4   :  { %v861_v30 = vpop.f32.mrb[4].mxu0  ;;  %v3566_v31 = vpop.f32.mrb[4].mxu1 }
 0x2c5   :  { %v862_v32 = vadd.f32 %v3564_v29, %v861_v30  ;;  %v2549_v33 = vpop.f32.mrb[5].mxu0  ;;  %v2577_v34 = vpop.f32.mrb[5].mxu1 }
 0x2c6   :  { %v864_v35 = vpop.f32.mrb[6].mxu0  ;;  %v3569_v36 = vpop.f32.mrb[6].mxu1  ;;  %v2872_v34 = vld [vmem:[#allocation14 + $0x54] ss:$8 sps:$4 sm:$0xff]  }
 0x2c7   :  { %v865_v37 = vadd.f32 %v3564_v29, %v864_v35  ;;  %v2550_v38 = vpop.f32.mrb[7].mxu0  ;;  %v2578_v39 = vpop.f32.mrb[7].mxu1  ;;  %v884_v43 = vmax.f32 %v862_v32, 0.0  ;;  %v2867_v32 = vld [vmem:[#allocation14 + $0x40] ss:$8 sps:$4 sm:$0xff]  }
 0x2c8   :  { %v2870_v35 = vld [vmem:[#allocation14 + $0x50] ss:$8 sps:$4 sm:$0xff]   ;;  %v2873_v38 = vld [vmem:[#allocation14 + $0x60] ss:$8 sps:$4 sm:$0xff]   ;;  %v2878_v39 = vld [vmem:[#allocation14 + $0x74] ss:$8 sps:$4 sm:$0xff]  }
 0x2c9   :  { %v885_v44 = vmax.f32 %v865_v37, 0.0  ;;  %v2875_v37 = vld [vmem:[#allocation14 + $0x64] ss:$8 sps:$4 sm:$0xff]  }
 0x2cb   :  { %v3572_v46 = vpack.c.bf16 %v885_v44, %v884_v43  ;;  %v2876_v44 = vld [vmem:[#allocation14 + $0x70] ss:$8 sps:$4 sm:$0xff]  }
 0x2cc   :  { %v869_v49 = vpop.f32.mrb[8].mxu0  ;;  %v3574_v50 = vpop.f32.mrb[8].mxu1 }
 0x2cd   :  { %v870_v52 = vadd.f32 %v3564_v29, %v869_v49  ;;  %v2553_v53 = vpop.f32.mrb[9].mxu0  ;;  %v2581_v54 = vpop.f32.mrb[9].mxu1  ;;  %1303 = vmatmul.mubr.bf16.vlgmr.msra.gmra.mrb[16].mxu1 %v3572_v46  ;;  %v2881_v49 = vld [vmem:[%s3752_s9 + $0x4] ss:$8 sps:$4 sm:$0xff]  }
 0x2ce   :  { %v872_v55 = vpop.f32.mrb[10].mxu0  ;;  %v3578_v56 = vpop.f32.mrb[10].mxu1  ;;  %1424 = vmatpush1.bf16.msra.mxu1 %v2855_v45  ;;  %1312 = vmatprep.mubr.bf16.mxu1 %v3228_v26 }
 0x2cf   :  { %v873_v58 = vadd.f32 %v3564_v29, %v872_v55  ;;  %v2554_v59 = vpop.f32.mrb[11].mxu0  ;;  %v2582_v60 = vpop.f32.mrb[11].mxu1  ;;  %1425 = vmatprep.subr.bf16.mxu1 %v2860_v47  ;;  %v886_v0 = vmax.f32 %v870_v52, 0.0 }
 0x2d1   :  { %v887_v1 = vmax.f32 %v873_v58, 0.0 }
 0x2d2   :  { %1426 = vmatpush1.bf16.msra.mxu1 %v2858_v57 }
 0x2d3   :  { %v3582_v4 = vpack.c.bf16 %v887_v1, %v886_v0  ;;  %1427 = vmatprep.subr.bf16.mxu1 %v2863_v61 }
 0x2d4   :  { %v877_v7 = vpop.f32.mrb[12].mxu0  ;;  %v3584_v8 = vpop.f32.mrb[12].mxu1 }
 0x2d5   :  { %v878_v11 = vadd.f32 %v3564_v29, %v877_v7  ;;  %v2557_v12 = vpop.f32.mrb[13].mxu0  ;;  %v2585_v13 = vpop.f32.mrb[13].mxu1 }
 0x2d6   :  { %v880_v14 = vpop.f32.mrb[14].mxu0  ;;  %v1023_v15 = vpop.f32.mrb[14].mxu1  ;;  %1428 = vmatpush1.bf16.msra.mxu1 %v2861_v2 }
 0x2d7   :  { %v888_v17 = vmax.f32 %v878_v11, 0.0  ;;  %v881_v18 = vadd.f32 %v3564_v29, %v880_v14  ;;  %v2558_v19 = vpop.f32.mrb[15].mxu0  ;;  %v2586_v20 = vpop.f32.mrb[15].mxu1  ;;  %1429 = vmatprep.subr.bf16.mxu1 %v2866_v5  ;;  %v2884_v14 = vld [vmem:[%s3752_s9 + $0x14] ss:$8 sps:$4 sm:$0xff]  }
 0x2d8   :  { %v2893_v19 = vld [vmem:[%s3752_s9 + $0x44] ss:$8 sps:$4 sm:$0xff]   ;;  %v2891_v20 = vld [vmem:[%s3752_s9 + $0x40] ss:$8 sps:$4 sm:$0xff]  }
 0x2d9   :  { %v889_v30 = vmax.f32 %v881_v18, 0.0  ;;  %v2888_v18 = vld [vmem:[%s3752_s9 + $0x30] ss:$8 sps:$4 sm:$0xff]  }
 0x2da   :  { %1430 = vmatpush1.bf16.msra.mxu1 %v2864_v16  ;;  %v2885_v16 = vld [vmem:[%s3752_s9 + $0x20] ss:$8 sps:$4 sm:$0xff]  }
 0x2db   :  { %v3588_v33 = vpack.c.bf16 %v889_v30, %v888_v17  ;;  %1431 = vmatprep.subr.bf16.mxu1 %v2869_v23  ;;  %v2890_v17 = vld [vmem:[%s3752_s9 + $0x34] ss:$8 sps:$4 sm:$0xff]   ;;  %v2897_v30 = vld [vmem:[%s3752_s9 + $0x60] ss:$8 sps:$4 sm:$0xff]  }
 0x2dc   :  { %v2896_v23 = vld [vmem:[%s3752_s9 + $0x54] ss:$8 sps:$4 sm:$0xff]  }
 0x2de   :  { %1432 = vmatpush1.bf16.msra.mxu1 %v2867_v32  ;;  %v2902_v32 = vld [vmem:[%s3752_s9 + $0x74] ss:$8 sps:$4 sm:$0xff]  }
 0x2df   :  { %1433 = vmatprep.subr.bf16.mxu1 %v2872_v34  ;;  %v2900_v34 = vld [vmem:[%s3752_s9 + $0x70] ss:$8 sps:$4 sm:$0xff]  }
 0x2e2   :  { %1434 = vmatpush1.bf16.msra.mxu1 %v2870_v35  ;;  %v2916_v35 = vld [vmem:[#allocation17 + $0x30] sm:$0xff]  }
 0x2e3   :  { %1435 = vmatprep.subr.bf16.mxu1 %v2875_v37 }
 0x2e4   :  { %v1109_v40 = vpop.f32.mrb[16].mxu0 }
 0x2e5   :  { %v1110_v41 = vadd.f32 %v1109_v40, %v3566_v31  ;;  %v2605_v42 = vpop.f32.mrb[17].mxu0 }
 0x2e6   :  { %v1112_v43 = vpop.f32.mrb[18].mxu0  ;;  %1436 = vmatpush1.bf16.msra.mxu1 %v2873_v38 }
 0x2e7   :  { %v1132_v45 = vadd.f32 %v3564_v29, %v1110_v41  ;;  %v1113_v47 = vadd.f32 %v1112_v43, %v3569_v36  ;;  %v2606_v48 = vpop.f32.mrb[19].mxu0  ;;  %1437 = vmatprep.subr.bf16.mxu1 %v2878_v39 }
 0x2e9   :  { %v1133_v51 = vadd.f32 %v3564_v29, %v1113_v47  ;;  %v1138_v52 = vmax.f32 %v1132_v45, 0.0 }
 0x2ea   :  { %1438 = vmatpush1.bf16.msra.mxu1 %v2876_v44 }
 0x2eb   :  { %v1139_v53 = vmax.f32 %v1133_v51, 0.0  ;;  %1592 = vmatprep.subr.bf16.mxu1 %v2881_v49 }
 0x2ec   :  { %v1117_v31 = vpop.f32.mrb[20].mxu0 }
 0x2ed   :  { %v3597_v54 = vpack.c.bf16 %v1139_v53, %v1138_v52  ;;  %v1118_v55 = vadd.f32 %v1117_v31, %v3574_v50  ;;  %v2609_v57 = vpop.f32.mrb[21].mxu0  ;;  %v2920_v31 = vld [vmem:[%s3756_s13 + $0x8] sm:$0xff]  }
 0x2ee   :  { %v1120_v58 = vpop.f32.mrb[22].mxu0 }
 0x2ef   :  { %v1134_v36 = vadd.f32 %v3564_v29, %v1118_v55  ;;  %v1121_v59 = vadd.f32 %v1120_v58, %v3578_v56  ;;  %v2610_v60 = vpop.f32.mrb[23].mxu0 }
 0x2f1   :  { %v1135_v61 = vadd.f32 %v3564_v29, %v1121_v59  ;;  %v1140_v62 = vmax.f32 %v1134_v36, 0.0 }
 0x2f3   :  { %v1141_v63 = vmax.f32 %v1135_v61, 0.0  ;;  %v2921_v61 = vld [vmem:[%s3756_s13 + $0x10] sm:$0xff]  }
 0x2f4   :  { %v1125_v0 = vpop.f32.mrb[24].mxu0 }
 0x2f5   :  { %v1126_v1 = vadd.f32 %v1125_v0, %v3584_v8  ;;  %v2613_v2 = vpop.f32.mrb[25].mxu0  ;;  %v1154_v5 = vpack.c.bf16 %v1141_v63, %v1140_v62  ;;  %v2879_v8 = vld [vmem:[%s3752_s9] ss:$8 sps:$4 sm:$0xff]  }
 0x2f6   :  { %v1128_v6 = vpop.f32.mrb[26].mxu0 }
 0x2f7   :  { %v1136_v7 = vadd.f32 %v3564_v29, %v1126_v1  ;;  %v1129_v50 = vadd.f32 %v1128_v6, %v1023_v15  ;;  %v2614_v9 = vpop.f32.mrb[27].mxu0  ;;  %1313 = vmatmul.mubr.bf16.gmra.mrb[20].mxu1 %v1154_v5  ;;  %v2887_v15 = vld [vmem:[%s3752_s9 + $0x24] ss:$8 sps:$4 sm:$0xff]  }
 0x2f8   :  { %1322 = vmatprep.mubr.bf16.mxu1 %v3228_v26 }
 0x2f9   :  { %v1137_v56 = vadd.f32 %v3564_v29, %v1129_v50  ;;  %v1142_v11 = vmax.f32 %v1136_v7, 0.0  ;;  %v2882_v29 = vld [vmem:[%s3752_s9 + $0x10] ss:$8 sps:$4 sm:$0xff]  }
 0x2fb   :  { %v1143_v12 = vmax.f32 %v1137_v56, 0.0 }
 0x2fd   :  { %v1156_v13 = vpack.c.bf16 %v1143_v12, %v1142_v11 }
 0x2ff   :  { %1323 = vmatmul.mubr.bf16.gmra.mrb[24].mxu1 %v3582_v4 }
 0x300   :  { %1332 = vmatprep.mubr.bf16.mxu1 %v3228_v26 }
 0x307   :  { %1333 = vmatmul.mubr.bf16.gmra.mrb[28].mxu1 %v1156_v13 }
 0x308   :  { %1455 = vmatprep.mubr.bf16.mxu1 %v3228_v26 }
 0x30f   :  { %1456 = vmatmul.mubr.bf16.vlgmr.msra.gmra.mrb[16].mxu1 %v1154_v5 }
 0x310   :  { %1593 = vmatpush1.bf16.msra.mxu1 %v2879_v8  ;;  %1465 = vmatprep.mubr.bf16.mxu1 %v3228_v26 }
 0x311   :  { %1594 = vmatprep.subr.bf16.mxu1 %v2884_v14 }
 0x314   :  { %1595 = vmatpush1.bf16.msra.mxu1 %v2882_v29 }
 0x315   :  { %1596 = vmatprep.subr.bf16.mxu1 %v2887_v15 }
 0x317   :  { %1466 = vmatmul.mubr.bf16.gmra.mrb[20].mxu1 %v3582_v4 }
 0x318   :  { %1597 = vmatpush1.bf16.msra.mxu1 %v2885_v16  ;;  %1475 = vmatprep.mubr.bf16.mxu1 %v3228_v26 }
 0x319   :  { %1598 = vmatprep.subr.bf16.mxu1 %v2890_v17 }
 0x31c   :  { %1599 = vmatpush1.bf16.msra.mxu1 %v2888_v18 }
 0x31d   :  { %1600 = vmatprep.subr.bf16.mxu1 %v2893_v19 }
 0x31f   :  { %1476 = vmatmul.mubr.bf16.gmra.mrb[24].mxu1 %v1156_v13 }
 0x320   :  { %1601 = vmatpush1.bf16.msra.mxu1 %v2891_v20  ;;  %1485 = vmatprep.mubr.bf16.mxu1 %v3228_v26 }
 0x321   :  { %1602 = vmatprep.subr.bf16.mxu1 %v2896_v23 }
 0x324   :  { %1603 = vmatpush1.bf16.msra.mxu1 %v2894_v25 }
 0x325   :  { %1604 = vmatprep.subr.bf16.mxu1 %v2899_v27 }
 0x327   :  { %2377 = vmatmul.mubr.msk.bf16.gmra.mrb[28].mxu1 %vm3531_vm3, %v3588_v33  ;;  %v2915_v33 = vld [vmem:[#allocation17 + $0x70] sm:$0xff]  }
 0x328   :  { %1605 = vmatpush1.bf16.msra.mxu1 %v2897_v30  ;;  %1624 = vmatprep.mubr.bf16.mxu1 %v3228_v26 }
 0x329   :  { %1606 = vmatprep.subr.bf16.mxu1 %v2902_v32  ;;  %2483 = vmatprep.subr.bf16.mxu0 %v2915_v33 }
 0x32a   :  { %2484 = vmatpush3.bf16.msra.mxu0 %v2916_v35 }
 0x32b   :  { %2485 = vmatprep.subr.bf16.mxu0 %v2917_v28  ;;  %v2922_v28 = vld [vmem:[%s3756_s13 + $0x18] sm:$0xff]  }
 0x32c   :  { %1607 = vmatpush1.bf16.msra.mxu1 %v2900_v34 }
 0x32e   :  { %2486 = vmatpush3.bf16.msra.mxu0 %v2918_v3  ;;  %v2923_v3 = vld [vmem:[%s3756_s13 + $0x20] sm:$0xff]  }
 0x32f   :  { %2398 = vmatmul.mubr.msk.bf16.vlgmr.msra.gmra.mrb[16].mxu1 %vm2396_vm6, %v3597_v54 }
 0x330   :  { %1634 = vmatprep.mubr.bf16.mxu1 %v3228_v26 }
 0x337   :  { %1635 = vmatmul.mubr.bf16.gmra.mrb[20].mxu1 %v3572_v46  ;;  %v2919_v46 = vld [vmem:[%s3756_s13] sm:$0xff]  }
 0x338   :  { %1644 = vmatprep.mubr.bf16.mxu1 %v3228_v26  ;;  %2615 = vmatprep.subr.bf16.mxu0 %v2919_v46 }
 0x33f   :  { %1645 = vmatmul.mubr.bf16.gmra.mrb[24].mxu1 %v1154_v5 }
 0x340   :  { %1654 = vmatprep.mubr.bf16.mxu1 %v3228_v26  ;;  %v1681_v26 = vld [vmem:[%s3753_s10] sm:$0x3] }
 0x341   :  { %v3684_v37 = vrot.slane %v1681_v26, %v308_v24 }
 0x347   :  { %1655 = vmatmul.mubr.bf16.gmra.mrb[28].mxu1 %v3582_v4  ;;  %v1686_v4 = vrot.slane %v1681_v26, %v304_v22  ;;  %v2925_v26 = vld [vmem:[%s3756_s13 + $0x30] sm:$0xff]  }
 0x402   :  { %v1626_v38 = vpop.f32.mrb[16].mxu1 }
 0x403   :  { %v1693_v39 = vadd.f32 %v1686_v4, %v1626_v38  ;;  %v1628_v40 = vpop.f32.mrb[17].mxu1 }
 0x404   :  { %v1694_v41 = vadd.f32 %v3684_v37, %v1628_v40  ;;  %v1630_v42 = vpop.f32.mrb[18].mxu1 }
 0x405   :  { %v1695_v43 = vadd.f32 %v1686_v4, %v1630_v42  ;;  %v1632_v44 = vpop.f32.mrb[19].mxu1  ;;  %v1709_v47 = vmax.f32 %v1693_v39, 0.0  ;;  %v2399_v39 = vld [vmem:[%s3755_s12] ss:$0 sm:$0xff] }
 0x406   :  { %v1696_v45 = vadd.f32 %v3684_v37, %v1632_v44  ;;  %v1710_v49 = vmax.f32 %v1694_v41, 0.0 }
 0x407   :  { %v1711_v48 = vmax.f32 %v1695_v43, 0.0 }
 0x408   :  { %v1712_v51 = vmax.f32 %v1696_v45, 0.0 }
 0x409   :  { %v1725_v52 = vpack.c.bf16 %v1711_v48, %v1709_v47 }
 0x40a   :  { %v1726_v22 = vpack.c.bf16 %v1712_v51, %v1710_v49  ;;  %v1636_v53 = vpop.f32.mrb[20].mxu1 }
 0x40b   :  { %v1697_v21 = vadd.f32 %v1686_v4, %v1636_v53  ;;  %v1638_v24 = vpop.f32.mrb[21].mxu1 }
 0x40c   :  { %v1698_v54 = vadd.f32 %v3684_v37, %v1638_v24  ;;  %v1640_v55 = vpop.f32.mrb[22].mxu1  ;;  %1900 = vmatprep.mubr.bf16.mxu0 %v1726_v22 }
 0x40d   :  { %v1699_v57 = vadd.f32 %v1686_v4, %v1640_v55  ;;  %v1642_v58 = vpop.f32.mrb[23].mxu1  ;;  %1901 = vmatmul.mubr.bf16.vlgmr.msra.gmra.mrb[28].mxu0 %v1725_v52  ;;  %v1713_v59 = vmax.f32 %v1697_v21, 0.0 }
 0x40e   :  { %v1700_v36 = vadd.f32 %v3684_v37, %v1642_v58  ;;  %2616 = vmatpush3.bf16.msra.mxu0 %v2919_v46  ;;  %v1714_v62 = vmax.f32 %v1698_v54, 0.0  ;;  %v2924_v46 = vld [vmem:[%s3756_s13 + $0x28] sm:$0xff]  }
 0x40f   :  { %v1715_v60 = vmax.f32 %v1699_v57, 0.0  ;;  %2617 = vmatprep.subr.bf16.mxu0 %v2920_v31 }
 0x410   :  { %v1716_v63 = vmax.f32 %v1700_v36, 0.0 }
 0x411   :  { %v1727_v0 = vpack.c.bf16 %v1715_v60, %v1713_v59 }
 0x412   :  { %v1728_v1 = vpack.c.bf16 %v1716_v63, %v1714_v62  ;;  %v1646_v2 = vpop.f32.mrb[24].mxu1  ;;  %2618 = vmatpush3.bf16.msra.mxu0 %v2920_v31  ;;  %v2928_v63 = vld [vmem:[#allocation19 + $0x8] sm:$0xff]  }
 0x413   :  { %v1701_v5 = vadd.f32 %v1686_v4, %v1646_v2  ;;  %v1648_v6 = vpop.f32.mrb[25].mxu1  ;;  %2619 = vmatprep.subr.bf16.mxu0 %v2921_v61 }
 0x414   :  { %v1702_v7 = vadd.f32 %v3684_v37, %v1648_v6  ;;  %v1650_v50 = vpop.f32.mrb[26].mxu1  ;;  %1908 = vmatprep.mubr.bf16.mxu0 %v1728_v1 }
 0x415   :  { %v1703_v9 = vadd.f32 %v1686_v4, %v1650_v50  ;;  %v1652_v56 = vpop.f32.mrb[27].mxu1  ;;  %1909 = vmatmul.mubr.bf16.gmra.mrb[32].mxu0 %v1727_v0  ;;  %v1717_v12 = vmax.f32 %v1701_v5, 0.0 }
 0x416   :  { %v1704_v11 = vadd.f32 %v3684_v37, %v1652_v56  ;;  %2620 = vmatpush3.bf16.msra.mxu0 %v2921_v61  ;;  %v1718_v8 = vmax.f32 %v1702_v7, 0.0 }
 0x417   :  { %v1719_v13 = vmax.f32 %v1703_v9, 0.0  ;;  %2621 = vmatprep.subr.bf16.mxu0 %v2922_v28 }
 0x418   :  { %v1720_v14 = vmax.f32 %v1704_v11, 0.0 }
 0x419   :  { %v1729_v29 = vpack.c.bf16 %v1719_v13, %v1717_v12 }
 0x41a   :  { %v1730_v15 = vpack.c.bf16 %v1720_v14, %v1718_v8  ;;  %v1656_v16 = vpop.f32.mrb[28].mxu1  ;;  %2622 = vmatpush3.bf16.msra.mxu0 %v2922_v28 }
 0x41b   :  { %v1705_v17 = vadd.f32 %v1686_v4, %v1656_v16  ;;  %v1658_v18 = vpop.f32.mrb[29].mxu1  ;;  %2623 = vmatprep.subr.bf16.mxu0 %v2923_v3 }
 0x41c   :  { %v1706_v19 = vadd.f32 %v3684_v37, %v1658_v18  ;;  %v1660_v20 = vpop.f32.mrb[30].mxu1  ;;  %1916 = vmatprep.mubr.bf16.mxu0 %v1730_v15  ;;  %v2929_v18 = vld [vmem:[#allocation19 + $0x10] sm:$0xff]  }
 0x41d   :  { %v1707_v23 = vadd.f32 %v1686_v4, %v1660_v20  ;;  %v1662_v25 = vpop.f32.mrb[31].mxu1  ;;  %1917 = vmatmul.mubr.bf16.gmra.mrb[36].mxu0 %v1729_v29  ;;  %v1721_v30 = vmax.f32 %v1705_v17, 0.0  ;;  %v2926_v4 = vld [vmem:[%s3756_s13 + $0x38] sm:$0xff]   ;;  %v2416_v20 = vld [vmem:[%s3757_s14] ss:$0 sm:$0xff] }
 0x41e   :  { %v1708_v27 = vadd.f32 %v3684_v37, %v1662_v25  ;;  %v1722_v34 = vmax.f32 %v1706_v19, 0.0  ;;  %2624 = vmatpush3.bf16.msra.mxu0 %v2923_v3  ;;  %v2927_v37 = vld [vmem:[#allocation19] sm:$0xff]   ;;  %v2930_v19 = vld [vmem:[#allocation19 + $0x18] sm:$0xff]  }
 0x41f   :  { %v1723_v32 = vmax.f32 %v1707_v23, 0.0  ;;  %2625 = vmatprep.subr.bf16.mxu0 %v2924_v46 }
 0x420   :  { %v1724_v10 = vmax.f32 %v1708_v27, 0.0 }
 0x421   :  { %v1731_v33 = vpack.c.bf16 %v1723_v32, %v1721_v30 }
 0x422   :  { %v1732_v35 = vpack.c.bf16 %v1724_v10, %v1722_v34  ;;  %2626 = vmatpush3.bf16.msra.mxu0 %v2924_v46 }
 0x423   :  { %2627 = vmatprep.subr.bf16.mxu0 %v2925_v26 }
 0x424   :  { %1924 = vmatprep.mubr.bf16.mxu0 %v1732_v35 }
 0x425   :  { %1925 = vmatmul.mubr.bf16.gmra.mrb[40].mxu0 %v1731_v33 }
 0x426   :  { %2628 = vmatpush3.bf16.msra.mxu0 %v2925_v26 }
 0x427   :  { %2629 = vmatprep.subr.bf16.mxu0 %v2926_v4 }
 0x42a   :  { %2630 = vmatpush3.bf16.msra.mxu0 %v2926_v4 }
 0x42b   :  { %2639 = vmatprep.subr.bf16.mxu0 %v2927_v37 }
 0x4e0   :  { %v2487_v38 = vpop.f32.mrb[28].mxu0 }
 0x4e1   :  { %v2488_v40 = vpop.f32.mrb[29].mxu0 }
 0x4e2   :  { %v2489_v41 = vadd.f32 %v2488_v40, %v2487_v38  ;;  %v2490_v42 = vpop.f32.mrb[30].mxu0 }
 0x4e3   :  { %v2491_v43 = vpop.f32.mrb[31].mxu0 }
 0x4e4   :  { %v1903_v44 = vadd.f32 %v2489_v41, %v2399_v39  ;;  %v2492_v45 = vadd.f32 %v2491_v43, %v2490_v42 }
 0x4e6   :  { %v1906_v47 = vadd.f32 %v2492_v45, %v2399_v39  ;;  %v1933_v48 = vmax.f32 %v1903_v44, 0.0 }
 0x4e8   :  { %v1934_v49 = vmax.f32 %v1906_v47, 0.0  ;;  %v2493_v51 = vpop.f32.mrb[32].mxu0 }
 0x4e9   :  { %v2494_v52 = vpop.f32.mrb[33].mxu0 }
 0x4ea   :  { %v2495_v22 = vadd.f32 %v2494_v52, %v2493_v51  ;;  %v2496_v53 = vpop.f32.mrb[34].mxu0  ;;  %v1941_v21 = vpack.c.bf16 %v1934_v49, %v1933_v48 }
 0x4eb   :  { %v2497_v24 = vpop.f32.mrb[35].mxu0 }
 0x4ec   :  { %v1911_v31 = vadd.f32 %v2495_v22, %v2399_v39  ;;  %v2498_v54 = vadd.f32 %v2497_v24, %v2496_v53  ;;  %2631 = vmatprep.mubr.bf16.mxu0 %v1941_v21  ;;  %v2425_v22 = vld [vmem:[%s3759_s16] ss:$0 sm:$0xff]  ;;  %s3173_s16 = scalar_lea.vmem %s2224_s5, 1024 }
 0x4ed   :  { %p3174_p4 = scmp.ne.s32.totalorder %s2224_s5, %s3173_s16  ;;  %p3179_p6 = scmp.lt.s32.totalorder %s3173_s16, %s3173_s16 }
 0x4ee   :  { %v1914_v55 = vadd.f32 %v2498_v54, %v2399_v39  ;;  %v1935_v57 = vmax.f32 %v1911_v31, 0.0 }
 0x4ef   :  { %p3180_p7 = por %p3179_p6, %p3178_p5 }
 0x4f0   :  { %v1936_v58 = vmax.f32 %v1914_v55, 0.0  ;;  %v2499_v36 = vpop.f32.mrb[36].mxu0 }
 0x4f1   :  { %v2500_v59 = vpop.f32.mrb[37].mxu0  ;;  %p3181_p8 = pnand %p3180_p7, %p3174_p4 }
 0x4f2   :  { %v1942_v60 = vpack.c.bf16 %v1936_v58, %v1935_v57  ;;  %v2501_v61 = vadd.f32 %v2500_v59, %v2499_v36  ;;  %v2502_v62 = vpop.f32.mrb[38].mxu0 }
 0x4f3   :  { %v2503_v0 = vpop.f32.mrb[39].mxu0 }
 0x4f4   :  { %v1919_v1 = vadd.f32 %v2501_v61, %v2399_v39  ;;  %v2504_v2 = vadd.f32 %v2503_v0, %v2502_v62  ;;  %2632 = vmatmul.mubr.bf16.vlgmr.msra.gmra.mrb[44].mxu0 %v1942_v60 }
 0x4f5   :  { %2640 = vmatpush3.bf16.msra.mxu0 %v2927_v37 }
 0x4f6   :  { %v1922_v5 = vadd.f32 %v2504_v2, %v2399_v39  ;;  %2641 = vmatprep.subr.bf16.mxu0 %v2928_v63  ;;  %v1937_v6 = vmax.f32 %v1919_v1, 0.0 }
 0x4f8   :  { %v1938_v7 = vmax.f32 %v1922_v5, 0.0  ;;  %v2505_v50 = vpop.f32.mrb[40].mxu0 }
 0x4f9   :  { %v2506_v9 = vpop.f32.mrb[41].mxu0  ;;  %2642 = vmatpush3.bf16.msra.mxu0 %v2928_v63 }
 0x4fa   :  { %v2507_v56 = vadd.f32 %v2506_v9, %v2505_v50  ;;  %v2508_v11 = vpop.f32.mrb[42].mxu0  ;;  %v1943_v12 = vpack.c.bf16 %v1938_v7, %v1937_v6  ;;  %2643 = vmatprep.subr.bf16.mxu0 %v2929_v18 }
 0x4fb   :  { %v2509_v13 = vpop.f32.mrb[43].mxu0 }
 0x4fc   :  { %v1927_v8 = vadd.f32 %v2507_v56, %v2399_v39  ;;  %v2510_v14 = vadd.f32 %v2509_v13, %v2508_v11  ;;  %2635 = vmatprep.mubr.bf16.mxu0 %v1943_v12 }
 0x4fd   :  { %2644 = vmatpush3.bf16.msra.mxu0 %v2929_v18 }
 0x4fe   :  { %v1930_v29 = vadd.f32 %v2510_v14, %v2399_v39  ;;  %v1939_v15 = vmax.f32 %v1927_v8, 0.0  ;;  %2645 = vmatprep.subr.bf16.mxu0 %v2930_v19 }
 0x500   :  { %v1940_v16 = vmax.f32 %v1930_v29, 0.0 }
 0x501   :  { %2646 = vmatpush3.bf16.msra.mxu0 %v2930_v19 }
 0x502   :  { %v1944_v17 = vpack.c.bf16 %v1940_v16, %v1939_v15 }
 0x504   :  { %2636 = vmatmul.mubr.bf16.gmra.mrb[48].mxu0 %v1944_v17 }
 0x5c7   :  { %v2633_v23 = vpop.f32.mrb[44].mxu0 }
 0x5c8   :  { %v2059_v25 = vadd.f32 %v2633_v23, %v2416_v20  ;;  %v2050_v27 = vpop.f32.mrb[45].mxu0 }
 0x5c9   :  { %v2051_v30 = vadd.f32 %v2416_v20, %v2050_v27  ;;  %v2634_v32 = vpop.f32.mrb[46].mxu0 }
 0x5ca   :  { %v2062_v34 = vadd.f32 %v2634_v32, %v2416_v20  ;;  %v2053_v10 = vpop.f32.mrb[47].mxu0  ;;  %v2083_v35 = vmax.f32 %v2059_v25, 0.0 }
 0x5cb   :  { %v2054_v33 = vadd.f32 %v2416_v20, %v2053_v10  ;;  %v2081_v3 = vmax.f32 %v2051_v30, 0.0 }
 0x5cc   :  { %v2084_v28 = vmax.f32 %v2062_v34, 0.0 }
 0x5cd   :  { %v2082_v46 = vmax.f32 %v2054_v33, 0.0 }
 0x5ce   :  { %v2090_v26 = vpack.c.bf16 %v2084_v28, %v2083_v35 }
 0x5cf   :  { %v2089_v4 = vpack.c.bf16 %v2082_v46, %v2081_v3 }
 0x5d1   :  { %2647 = vmatprep.mubr.msk.bf16.mxu0 %vm2132_vm7, %v2089_v4 }
 0x5d2   :  { %2648 = vmatmul.mubr.msk.bf16.vlgmr.msra.gmra.mrb[52].mxu0 %vm2132_vm7, %v2090_v26 }
 0x5d7   :  { %v2637_v37 = vpop.f32.mrb[48].mxu0 }
 0x5d8   :  { %v2075_v38 = vadd.f32 %v2637_v37, %v2416_v20  ;;  %v2066_v39 = vpop.f32.mrb[49].mxu0 }
 0x5d9   :  { %v2067_v40 = vadd.f32 %v2416_v20, %v2066_v39  ;;  %v2638_v41 = vpop.f32.mrb[50].mxu0 }
 0x5da   :  { %v2078_v42 = vadd.f32 %v2638_v41, %v2416_v20  ;;  %v2069_v43 = vpop.f32.mrb[51].mxu0  ;;  %v2087_v45 = vmax.f32 %v2075_v38, 0.0 }
 0x5db   :  { %v2070_v44 = vadd.f32 %v2416_v20, %v2069_v43  ;;  %v2085_v48 = vmax.f32 %v2067_v40, 0.0 }
 0x5dc   :  { %v2088_v47 = vmax.f32 %v2078_v42, 0.0 }
 0x5dd   :  { %v2086_v49 = vmax.f32 %v2070_v44, 0.0 }
 0x5de   :  { %v2092_v51 = vpack.c.bf16 %v2088_v47, %v2087_v45 }
 0x5df   :  { %v2091_v52 = vpack.c.bf16 %v2086_v49, %v2085_v48 }
 0x5e1   :  { %2651 = vmatprep.mubr.msk.bf16.mxu0 %vm2132_vm7, %v2091_v52 }
 0x5e2   :  { %2652 = vmatmul.mubr.msk.bf16.gmra.mrb[56].mxu0 %vm2132_vm7, %v2092_v51 }
 0x6a5   :  { %v2649_v53 = vpop.f32.mrb[52].mxu0 }
 0x6a6   :  { %v2188_v21 = vadd.f32 %v2649_v53, %v2425_v22  ;;  %v2179_v24 = vpop.f32.mrb[53].mxu0 }
 0x6a7   :  { %v2180_v31 = vadd.f32 %v2425_v22, %v2179_v24  ;;  %v2650_v54 = vpop.f32.mrb[54].mxu0 }
 0x6a8   :  { %2212 = vst [vmem:[#allocation20 + $0x10] sm:$0xff] %v2188_v21  ;;  %v2191_v55 = vadd.f32 %v2650_v54, %v2425_v22  ;;  %v2182_v57 = vpop.f32.mrb[55].mxu0 }
 0x6a9   :  { %2210 = vst [vmem:[#allocation20] sm:$0xff] %v2180_v31  ;;  %v2183_v58 = vadd.f32 %v2425_v22, %v2182_v57 }
 0x6aa   :  { %2213 = vst [vmem:[#allocation20 + $0x18] sm:$0xff] %v2191_v55 }
 0x6ab   :  { %2211 = vst [vmem:[#allocation20 + $0x8] sm:$0xff] %v2183_v58 }
 0x6b5   :  { %v2653_v36 = vpop.f32.mrb[56].mxu0 }
 0x6b6   :  { %v2204_v59 = vadd.f32 %v2653_v36, %v2425_v22  ;;  %v2195_v60 = vpop.f32.mrb[57].mxu0 }
 0x6b7   :  { %v2196_v61 = vadd.f32 %v2425_v22, %v2195_v60  ;;  %v2654_v62 = vpop.f32.mrb[58].mxu0 }
 0x6b8   :  { %2216 = vst [vmem:[#allocation20 + $0x30] sm:$0xff] %v2204_v59  ;;  %v2207_v63 = vadd.f32 %v2654_v62, %v2425_v22  ;;  %v2198_v0 = vpop.f32.mrb[59].mxu0 }
 0x6b9   :  { %2214 = vst [vmem:[#allocation20 + $0x20] sm:$0xff] %v2196_v61  ;;  %v2199_v1 = vadd.f32 %v2425_v22, %v2198_v0 }
 0x6ba   :  { %2217 = vst [vmem:[#allocation20 + $0x38] sm:$0xff] %v2207_v63 }
 0x6bb   :  { %2215 = vst [vmem:[#allocation20 + $0x28] sm:$0xff] %v2199_v1 }
 0x6bc   :  { %3184 = shalt.err (!%p3181_p8)
}
 0x6bd   :  { %s3775_s9 = sld [smem:[#allocation30_spill]] }
 0x6c3   :  { %s3185_s11 = scalar_lea.hbm %s3775_s9, 1024 }
 0x6c4   :  { %p3186_p9 = scmp.ne.s32.totalorder %s3775_s9, %s3185_s11  ;;  %p3189_p10 = scmp.lt.u32.totalorder %s3185_s11, %s3775_s9 }
 0x6c6   :  { %p3191_p11 = pnand %p3189_p10, %p3186_p9 }
 0x6c8   :  { %3194 = shalt.err (!%p3191_p11)
}
 0x6c9   :  { %2229 = dma.vmem_to_hbm [thread:$0]  %s2224_s5, 1024, %s3775_s9, [#allocation4], %s3218_s23, %s3218_s23, %s3219_s19  }
 0x6ca   :  { %3207 = dma.done.wait [#allocation4], 1024  }
 0x6cb   :  { %3208 = vsyncadd [#allocation4], 4294966272 }
 0x6cc   :  { %2233 = vsyncpa [#allocation3], 1 }
 0x6cd   :  { %2234 = vsyncpa [#allocation6], 1 }
 0x6ce   :  { %2235 = vsyncpa [#allocation9], 1 }
 0x6cf   :  { %2236 = vsyncpa [#allocation12], 1 }
 0x6d0   :  { %2237 = vsyncpa [#allocation15], 1 }
 0x6d1   :  { %2238 = vsyncpa [#allocation18], 1 }
 0x6d2   :  { %2239 = vsyncpa [#allocation4], 1 }

</bundles_post_ra>
